<compile_context>
chip_gen: v5e
topology: v5e:2x2
jax: 0.10.0
libtpu: 0.0.40
codegen_flags: <defaults>
</compile_context>

<pallas_src>
import jax
import jax.numpy as jnp
from jax.experimental import pallas as pl
from jax.experimental.pallas import tpu as pltpu

# Problem sizes (small, consistent with the module's forward; batch = 1 per init_states).
B = 1
T = 8             # sequence length
C = 32            # controller (LSTM) hidden size
M = 16            # memory word size
N = 16            # number of memory rows
S = 8             # per-module state width (4 modules gate-mixed via bmm)
D_IN = 2 + M      # controller input: [x_t, error, prev_read]

HEAD_W = 128      # lane width of the head half of the fused projection slab
# 8-lane-aligned head slab column layout:
_GATE0, _GATE1 = 0, 4          # gate logits (4)        -- raw (softmax)
_CROL = 8                      # crol logit (1)         -- 0.5-scaled (tanh sigmoid)
_TAIL0, _TAIL1 = 16, 20        # last column of the 4 module-state projections (tanh)
_K0, _K1 = 32, 32 + M          # read-head key pre-activation (tanh)
_BETA = 48                     # beta pre-activation (softplus, raw)
_GI = 56                       # interpolation-gate logit -- 0.5-scaled (tanh sigmoid)


def _softplus(x):
    # overflow-safe softplus: max(x,0) + log(1 + exp(-|x|))
    return jnp.maximum(x, 0.0) + jnp.log(1.0 + jnp.exp(-jnp.abs(x)))


def ntm_kernel(x_ref, y_ref,            # SMEM: f32[T] each
               memT_ref,                # VMEM: (M, N)    memory transpose (for k @ M^T)
               w_mem_ref,               # VMEM: (N, 4C)   gate-scaled (mem @ W_read)
               w_fused_ref,             # VMEM: (C, 2*HEAD_W) = [w_head | gate-scaled W_hh]
               rows_ref,                # VMEM: (4, 128)  rows: w_x, w_err, b_lstm, b_head
               out_ref, gate_ref):      # outputs: (T, 1), (T, 4)
    memT = memT_ref[...]                # (M, N)
    w_mem = w_mem_ref[...]              # (N, 4C)
    w_fused = w_fused_ref[...]          # (C, 256)
    rows = rows_ref[...]                # (4, 128)
    w_x = rows[0:1, :]                  # (1, 4C)  coefficient of x_t     (gate-scaled)
    w_e = rows[1:2, :]                  # (1, 4C)  coefficient of error   (gate-scaled)
    b_lstm = rows[2:3, :]               # (1, 4C)  LSTM bias              (gate-scaled)
    b_head = rows[3:4, :]               # (1, HEAD_W) head bias (crol/g_i cols 0.5-scaled)

    # --- recurrent carries (batch 1, feature axis on lanes) ---
    c = jnp.zeros((1, C), jnp.float32)
    z_hh = jnp.zeros((1, 4 * C), jnp.float32)         # h_prev @ W_hh  (h_0 = 0)
    z_mem = jnp.zeros((1, 4 * C), jnp.float32)        # w_prev @ (mem @ W_read)  (w_0 = 0)
    prev_gate = jnp.full((1, 4), 0.25, jnp.float32)   # init_states: [0.25]*4
    prev_w = jnp.zeros((1, N), jnp.float32)           # init_states: zeros((1, N))
    err = jnp.zeros((1, 1), jnp.float32)              # init_states: [[0.0]]

    out_rows = []
    gate_rows = []

    # Fully unrolled time loop (T is static).
    for t in range(T):
        x_t = x_ref[t]
        y_t = y_ref[t]

        # ---- LSTM controller: pre-activation is a sum of carried MXU partials ----
        # i/f/o columns of every term are pre-scaled by 0.5 in the wrapper, so one
        # full-width tanh recovers all four gates (sigmoid(x) = 0.5*(1+tanh(x/2))).
        z = z_hh + z_mem + x_t * w_x + err * w_e + b_lstm          # (1, 4C) = one vreg
        th = jnp.tanh(z)                                           # single EUP push
        i_g = 0.5 * (1.0 + th[:, 0:C])
        f_g = 0.5 * (1.0 + th[:, C:2 * C])
        g_g = th[:, 2 * C:3 * C]
        o_g = 0.5 * (1.0 + th[:, 3 * C:4 * C])
        c = f_g * c + i_g * g_g
        h = o_g * jnp.tanh(c)                                      # controller_outp, (1, C)

        # ---- fused head projection + next-step W_hh partial: ONE (1,32)@(32,256) ----
        hp = jnp.dot(h, w_fused, preferred_element_type=jnp.float32)    # (1, 256)
        head = hp[:, 0:HEAD_W] + b_head                                  # (1, 128)
        z_hh = hp[:, HEAD_W:2 * HEAD_W]          # W_hh @ h  -> consumed NEXT step

        th_h = jnp.tanh(head)                    # single EUP push for all head nonlins
        gate_logits = head[:, _GATE0:_GATE1]                         # (1, 4) raw
        crol = 0.5 * (1.0 + th_h[:, _CROL:_CROL + 1])                # sigmoid via tanh
        out_tail = th_h[:, _TAIL0:_TAIL1]                            # (1, 4) = states[i][:, -1]
        k = th_h[:, _K0:_K1]                                         # (1, M)
        beta = _softplus(head[:, _BETA:_BETA + 1])                   # (1, 1)
        g_i = 0.5 * (1.0 + th_h[:, _GI:_GI + 1])                     # sigmoid via tanh

        # ---- NTMCell gating path (exact semantics) ----
        gm = jnp.max(gate_logits, axis=-1, keepdims=True)
        ge = jnp.exp(gate_logits - gm)
        gate_sm = ge * pl.reciprocal(jnp.sum(ge, axis=-1, keepdims=True), approx=True)
        gate = gate_sm * crol + (1.0 - crol) * prev_gate             # (1, 4)

        # out_state[:, -1] == sum_i gate[:, i] * tanh(proj_i)[:, -1]
        output = jnp.sum(gate * out_tail, axis=-1, keepdims=True)    # (1, 1)

        # ---- read head: content addressing + gated interpolation ----
        sl = beta * jnp.dot(k, memT, preferred_element_type=jnp.float32)   # (1, N)
        smx = jnp.max(sl, axis=-1, keepdims=True)
        se = jnp.exp(sl - smx)
        wc = se * pl.reciprocal(jnp.sum(se, axis=-1, keepdims=True), approx=True)
        w_new = g_i * wc + (1.0 - g_i) * prev_w                      # (1, N)

        # ---- carry update (prev_read @ W_read folded as w_new @ (mem @ W_read)) ----
        z_mem = jnp.dot(w_new, w_mem, preferred_element_type=jnp.float32)  # (1, 4C)
        prev_gate = gate
        prev_w = w_new
        err = y_t - output                                           # error = _y - output

        out_rows.append(output)
        gate_rows.append(gate)

    # ---- two full-block stores after the unrolled loop (no per-step stores) ----
    out_ref[...] = jnp.concatenate(out_rows, axis=0)                 # (T, 1)
    gate_ref[...] = jnp.concatenate(gate_rows, axis=0)               # (T, 4)


def init_params(key):
    ks = jax.random.split(key, 16)
    sc = 0.1
    return {
        "mem":    sc * jax.random.normal(ks[0], (N, M), jnp.float32),
        "w_ih":   sc * jax.random.normal(ks[1], (D_IN, 4 * C), jnp.float32),
        "w_hh":   sc * jax.random.normal(ks[2], (C, 4 * C), jnp.float32),
        "b_lstm": sc * jax.random.normal(ks[3], (1, 4 * C), jnp.float32),
        "w_lin":  sc * jax.random.normal(ks[4], (C, 4), jnp.float32),
        "b_lin":  sc * jax.random.normal(ks[5], (1, 4), jnp.float32),
        "w_crol": sc * jax.random.normal(ks[6], (C, 1), jnp.float32),
        "b_crol": sc * jax.random.normal(ks[7], (1, 1), jnp.float32),
        "w_s":    sc * jax.random.normal(ks[8], (C, 4 * S), jnp.float32),
        "b_s":    sc * jax.random.normal(ks[9], (1, 4 * S), jnp.float32),
        "w_k":    sc * jax.random.normal(ks[10], (C, M), jnp.float32),
        "b_k":    sc * jax.random.normal(ks[11], (1, M), jnp.float32),
        "w_beta": sc * jax.random.normal(ks[12], (C, 1), jnp.float32),
        "b_beta": sc * jax.random.normal(ks[13], (1, 1), jnp.float32),
        "w_gh":   sc * jax.random.normal(ks[14], (C, 1), jnp.float32),
        "b_gh":   sc * jax.random.normal(ks[15], (1, 1), jnp.float32),
    }


def ntm_forward(x, y, params):
    """x, y: f32[1, T]. Returns (outputs f32[1, T], gate_trajectory f32[T, 4])."""
    assert x.shape == (B, T) and y.shape == (B, T)
    x_t = x.reshape(T).astype(jnp.float32)
    y_t = y.reshape(T).astype(jnp.float32)

    mem = params["mem"].astype(jnp.float32)        # (N, M)
    memT = mem.T                                   # (M, N)

    # Gate-column scale: sigmoid(x) = 0.5*(1+tanh(x/2)) -> pre-scale i/f/o columns by
    # 0.5 (tanh columns for g stay at 1.0). Applied to EVERY contribution to z.
    s_gate = jnp.concatenate([
        jnp.full((C,), 0.5, jnp.float32),   # i
        jnp.full((C,), 0.5, jnp.float32),   # f
        jnp.ones((C,), jnp.float32),        # g
        jnp.full((C,), 0.5, jnp.float32),   # o
    ])[None, :]                                                     # (1, 4C)

    # prev_read @ W_read folded into the attention-weight carry:
    #   prev_read = w_prev @ mem  =>  prev_read @ W_read = w_prev @ (mem @ W_read)
    w_read = params["w_ih"][2:, :]                                  # (M, 4C)
    w_mem_s = (mem @ w_read) * s_gate                               # (N, 4C) = (16, 128)
    w_hh_s = params["w_hh"] * s_gate                                # (C, 4C) = (32, 128)

    # Head slab on 8-lane-aligned offsets; crol / g_i columns pre-scaled by 0.5 so the
    # single full-width tanh(head) recovers their sigmoids. Only the last column of
    # each module-state projection is needed (out_state[:, -1]).
    w_s_tail = params["w_s"][:, S - 1::S]          # (C, 4)
    b_s_tail = params["b_s"][:, S - 1::S]          # (1, 4)
    w_head = jnp.zeros((C, HEAD_W), jnp.float32)
    w_head = w_head.at[:, _GATE0:_GATE1].set(params["w_lin"])
    w_head = w_head.at[:, _CROL:_CROL + 1].set(0.5 * params["w_crol"])
    w_head = w_head.at[:, _TAIL0:_TAIL1].set(w_s_tail)
    w_head = w_head.at[:, _K0:_K1].set(params["w_k"])
    w_head = w_head.at[:, _BETA:_BETA + 1].set(params["w_beta"])
    w_head = w_head.at[:, _GI:_GI + 1].set(0.5 * params["w_gh"])
    b_head = jnp.zeros((1, HEAD_W), jnp.float32)
    b_head = b_head.at[:, _GATE0:_GATE1].set(params["b_lin"])
    b_head = b_head.at[:, _CROL:_CROL + 1].set(0.5 * params["b_crol"])
    b_head = b_head.at[:, _TAIL0:_TAIL1].set(b_s_tail)
    b_head = b_head.at[:, _K0:_K1].set(params["b_k"])
    b_head = b_head.at[:, _BETA:_BETA + 1].set(params["b_beta"])
    b_head = b_head.at[:, _GI:_GI + 1].set(0.5 * params["b_gh"])

    # Fused per-step RHS: [head projection | gate-scaled W_hh]  ->  (C, 256).
    w_fused = jnp.concatenate([w_head, w_hh_s], axis=1)             # (32, 256)

    # Row slab: gate-scaled x-coeff, error-coeff, LSTM bias, plus head bias (width 128).
    rows = jnp.concatenate(
        [params["w_ih"][0:1, :] * s_gate,
         params["w_ih"][1:2, :] * s_gate,
         params["b_lstm"] * s_gate,
         b_head],
        axis=0)                                                      # (4, 128)

    smem = pl.BlockSpec(memory_space=pltpu.MemorySpace.SMEM)
    vmem = pl.BlockSpec(memory_space=pltpu.MemorySpace.VMEM)

    out, gates = pl.pallas_call(
        ntm_kernel,
        out_shape=(jax.ShapeDtypeStruct((T, 1), jnp.float32),
                   jax.ShapeDtypeStruct((T, 4), jnp.float32)),
        in_specs=[smem, smem, vmem, vmem, vmem, vmem],
        out_specs=(vmem, vmem),
    )(x_t, y_t, memT, w_mem_s, w_fused, rows)

    return out.reshape(1, T), gates


if __name__ == "__main__":
    key = jax.random.PRNGKey(0)
    kx, ky, kp = jax.random.split(key, 3)
    x = jax.random.normal(kx, (B, T), jnp.float32)
    y = jax.random.normal(ky, (B, T), jnp.float32)
    params = init_params(kp)

    out, gate_traj = ntm_forward(x, y, params)
    jax.block_until_ready(out)
    jax.block_until_ready(gate_traj)

    assert out.shape == (1, T)
    assert gate_traj.shape == (T, 4)
    assert bool(jnp.all(jnp.isfinite(out)))
    assert bool(jnp.all(jnp.isfinite(gate_traj)))
    print("KERNEL_OK")
</pallas_src>

<mosaic_0001>
module attributes {stable_mosaic.version = 11 : i64} {
  func.func @ntm_kernel(%arg0: memref<8xf32, #tpu.memory_space<smem>>, %arg1: memref<8xf32, #tpu.memory_space<smem>>, %arg2: memref<16x16xf32, #tpu.memory_space<vmem>>, %arg3: memref<16x128xf32, #tpu.memory_space<vmem>>, %arg4: memref<32x256xf32, #tpu.memory_space<vmem>>, %arg5: memref<4x128xf32, #tpu.memory_space<vmem>>, %arg6: memref<8x1xf32, #tpu.memory_space<vmem>>, %arg7: memref<8x4xf32, #tpu.memory_space<vmem>>) attributes {dimension_semantics = [], scalar_prefetch = 0 : i64, scratch_operands = 0 : i64, tpu.core_type = #tpu.core_type<tc>} {
    %c0 = arith.constant 0 : index
    %c0_0 = arith.constant 0 : index
    %0 = vector.load %arg2[%c0, %c0_0] : memref<16x16xf32, #tpu.memory_space<vmem>>, vector<16x16xf32>
    %c0_1 = arith.constant 0 : index
    %c0_2 = arith.constant 0 : index
    %1 = vector.load %arg3[%c0_1, %c0_2] : memref<16x128xf32, #tpu.memory_space<vmem>>, vector<16x128xf32>
    %c0_3 = arith.constant 0 : index
    %c0_4 = arith.constant 0 : index
    %2 = vector.load %arg4[%c0_3, %c0_4] : memref<32x256xf32, #tpu.memory_space<vmem>>, vector<32x256xf32>
    %c0_5 = arith.constant 0 : index
    %c0_6 = arith.constant 0 : index
    %3 = vector.load %arg5[%c0_5, %c0_6] : memref<4x128xf32, #tpu.memory_space<vmem>>, vector<4x128xf32>
    %4 = vector.extract_strided_slice %3 {offsets = [0, 0], sizes = [1, 128], strides = [1, 1]} : vector<4x128xf32> to vector<1x128xf32>
    %5 = vector.extract_strided_slice %3 {offsets = [1, 0], sizes = [1, 128], strides = [1, 1]} : vector<4x128xf32> to vector<1x128xf32>
    %6 = vector.extract_strided_slice %3 {offsets = [2, 0], sizes = [1, 128], strides = [1, 1]} : vector<4x128xf32> to vector<1x128xf32>
    %7 = vector.extract_strided_slice %3 {offsets = [3, 0], sizes = [1, 128], strides = [1, 1]} : vector<4x128xf32> to vector<1x128xf32>
    %cst = arith.constant 0.000000e+00 : f32
    %8 = vector.broadcast %cst : f32 to vector<1x32xf32>
    %cst_7 = arith.constant 0.000000e+00 : f32
    %9 = vector.broadcast %cst_7 : f32 to vector<1x128xf32>
    %cst_8 = arith.constant 0.000000e+00 : f32
    %10 = vector.broadcast %cst_8 : f32 to vector<1x128xf32>
    %cst_9 = arith.constant 2.500000e-01 : f32
    %11 = vector.broadcast %cst_9 : f32 to vector<1x4xf32>
    %cst_10 = arith.constant 0.000000e+00 : f32
    %12 = vector.broadcast %cst_10 : f32 to vector<1x16xf32>
    %cst_11 = arith.constant 0.000000e+00 : f32
    %13 = vector.broadcast %cst_11 : f32 to vector<1x1xf32>
    %c0_12 = arith.constant 0 : index
    %14 = memref.load %arg0[%c0_12] : memref<8xf32, #tpu.memory_space<smem>>
    %c0_13 = arith.constant 0 : index
    %15 = memref.load %arg1[%c0_13] : memref<8xf32, #tpu.memory_space<smem>>
    %16 = arith.addf %9, %10 : vector<1x128xf32>
    %17 = vector.broadcast %14 : f32 to vector<1x128xf32>
    %18 = arith.mulf %17, %4 : vector<1x128xf32>
    %19 = arith.addf %16, %18 : vector<1x128xf32>
    %20 = vector.broadcast %13 : vector<1x1xf32> to vector<1x128xf32>
    %21 = arith.mulf %20, %5 : vector<1x128xf32>
    %22 = arith.addf %19, %21 : vector<1x128xf32>
    %23 = arith.addf %22, %6 : vector<1x128xf32>
    %24 = math.tanh %23 : vector<1x128xf32>
    %25 = vector.extract_strided_slice %24 {offsets = [0, 0], sizes = [1, 32], strides = [1, 1]} : vector<1x128xf32> to vector<1x32xf32>
    %cst_14 = arith.constant 1.000000e+00 : f32
    %26 = vector.broadcast %cst_14 : f32 to vector<1x32xf32>
    %27 = arith.addf %26, %25 : vector<1x32xf32>
    %cst_15 = arith.constant 5.000000e-01 : f32
    %28 = vector.broadcast %cst_15 : f32 to vector<1x32xf32>
    %29 = arith.mulf %28, %27 : vector<1x32xf32>
    %30 = vector.extract_strided_slice %24 {offsets = [0, 32], sizes = [1, 32], strides = [1, 1]} : vector<1x128xf32> to vector<1x32xf32>
    %cst_16 = arith.constant 1.000000e+00 : f32
    %31 = vector.broadcast %cst_16 : f32 to vector<1x32xf32>
    %32 = arith.addf %31, %30 : vector<1x32xf32>
    %cst_17 = arith.constant 5.000000e-01 : f32
    %33 = vector.broadcast %cst_17 : f32 to vector<1x32xf32>
    %34 = arith.mulf %33, %32 : vector<1x32xf32>
    %35 = vector.extract_strided_slice %24 {offsets = [0, 64], sizes = [1, 32], strides = [1, 1]} : vector<1x128xf32> to vector<1x32xf32>
    %36 = vector.extract_strided_slice %24 {offsets = [0, 96], sizes = [1, 32], strides = [1, 1]} : vector<1x128xf32> to vector<1x32xf32>
    %cst_18 = arith.constant 1.000000e+00 : f32
    %37 = vector.broadcast %cst_18 : f32 to vector<1x32xf32>
    %38 = arith.addf %37, %36 : vector<1x32xf32>
    %cst_19 = arith.constant 5.000000e-01 : f32
    %39 = vector.broadcast %cst_19 : f32 to vector<1x32xf32>
    %40 = arith.mulf %39, %38 : vector<1x32xf32>
    %41 = arith.mulf %34, %8 : vector<1x32xf32>
    %42 = arith.mulf %29, %35 : vector<1x32xf32>
    %43 = arith.addf %41, %42 : vector<1x32xf32>
    %44 = math.tanh %43 : vector<1x32xf32>
    %45 = arith.mulf %40, %44 : vector<1x32xf32>
    %cst_20 = arith.constant dense<0.000000e+00> : vector<1x256xf32>
    %46 = tpu.matmul %45, %2, %cst_20 {dimension_numbers = #tpu.dot_dimension_numbers<[1], [0], [0], [1], [0, 0, 1, 1], [], []>} : vector<1x32xf32>, vector<32x256xf32>, vector<1x256xf32> -> vector<1x256xf32>
    %47 = vector.extract_strided_slice %46 {offsets = [0, 0], sizes = [1, 128], strides = [1, 1]} : vector<1x256xf32> to vector<1x128xf32>
    %48 = arith.addf %47, %7 : vector<1x128xf32>
    %49 = vector.extract_strided_slice %46 {offsets = [0, 128], sizes = [1, 128], strides = [1, 1]} : vector<1x256xf32> to vector<1x128xf32>
    %50 = math.tanh %48 : vector<1x128xf32>
    %51 = vector.extract_strided_slice %48 {offsets = [0, 0], sizes = [1, 4], strides = [1, 1]} : vector<1x128xf32> to vector<1x4xf32>
    %52 = vector.extract_strided_slice %50 {offsets = [0, 8], sizes = [1, 1], strides = [1, 1]} : vector<1x128xf32> to vector<1x1xf32>
    %cst_21 = arith.constant 1.000000e+00 : f32
    %53 = vector.broadcast %cst_21 : f32 to vector<1x1xf32>
    %54 = arith.addf %53, %52 : vector<1x1xf32>
    %cst_22 = arith.constant 5.000000e-01 : f32
    %55 = vector.broadcast %cst_22 : f32 to vector<1x1xf32>
    %56 = arith.mulf %55, %54 : vector<1x1xf32>
    %57 = vector.extract_strided_slice %50 {offsets = [0, 16], sizes = [1, 4], strides = [1, 1]} : vector<1x128xf32> to vector<1x4xf32>
    %58 = vector.extract_strided_slice %50 {offsets = [0, 32], sizes = [1, 16], strides = [1, 1]} : vector<1x128xf32> to vector<1x16xf32>
    %59 = vector.extract_strided_slice %48 {offsets = [0, 48], sizes = [1, 1], strides = [1, 1]} : vector<1x128xf32> to vector<1x1xf32>
    %cst_23 = arith.constant 0.000000e+00 : f32
    %60 = vector.broadcast %cst_23 : f32 to vector<1x1xf32>
    %61 = arith.maximumf %59, %60 : vector<1x1xf32>
    %62 = math.absf %59 : vector<1x1xf32>
    %cst_24 = arith.constant 0.000000e+00 : f32
    %63 = vector.broadcast %cst_24 : f32 to vector<1x1xf32>
    %64 = arith.subf %63, %62 : vector<1x1xf32>
    %65 = math.exp %64 : vector<1x1xf32>
    %cst_25 = arith.constant 1.000000e+00 : f32
    %66 = vector.broadcast %cst_25 : f32 to vector<1x1xf32>
    %67 = arith.addf %66, %65 : vector<1x1xf32>
    %68 = math.log %67 : vector<1x1xf32>
    %69 = arith.addf %61, %68 : vector<1x1xf32>
    %70 = vector.extract_strided_slice %50 {offsets = [0, 56], sizes = [1, 1], strides = [1, 1]} : vector<1x128xf32> to vector<1x1xf32>
    %cst_26 = arith.constant 1.000000e+00 : f32
    %71 = vector.broadcast %cst_26 : f32 to vector<1x1xf32>
    %72 = arith.addf %71, %70 : vector<1x1xf32>
    %cst_27 = arith.constant 5.000000e-01 : f32
    %73 = vector.broadcast %cst_27 : f32 to vector<1x1xf32>
    %74 = arith.mulf %73, %72 : vector<1x1xf32>
    %cst_28 = arith.constant dense<0xFF800000> : vector<1xf32>
    %75 = vector.multi_reduction <maximumf>, %51, %cst_28 [1] : vector<1x4xf32> to vector<1xf32>
    %76 = vector.shape_cast %75 : vector<1xf32> to vector<1x1xf32>
    %77 = vector.broadcast %76 : vector<1x1xf32> to vector<1x4xf32>
    %78 = arith.subf %51, %77 : vector<1x4xf32>
    %79 = math.exp %78 : vector<1x4xf32>
    %cst_29 = arith.constant dense<0.000000e+00> : vector<1xf32>
    %80 = vector.multi_reduction <add>, %79, %cst_29 [1] : vector<1x4xf32> to vector<1xf32>
    %81 = vector.shape_cast %80 : vector<1xf32> to vector<1x1xf32>
    %82 = tpu.reciprocal %81 {approx = true} : vector<1x1xf32> -> vector<1x1xf32>
    %83 = vector.broadcast %82 : vector<1x1xf32> to vector<1x4xf32>
    %84 = arith.mulf %79, %83 : vector<1x4xf32>
    %85 = vector.broadcast %56 : vector<1x1xf32> to vector<1x4xf32>
    %86 = arith.mulf %84, %85 : vector<1x4xf32>
    %cst_30 = arith.constant 1.000000e+00 : f32
    %87 = vector.broadcast %cst_30 : f32 to vector<1x1xf32>
    %88 = arith.subf %87, %56 : vector<1x1xf32>
    %89 = vector.broadcast %88 : vector<1x1xf32> to vector<1x4xf32>
    %90 = arith.mulf %89, %11 : vector<1x4xf32>
    %91 = arith.addf %86, %90 : vector<1x4xf32>
    %92 = arith.mulf %91, %57 : vector<1x4xf32>
    %cst_31 = arith.constant dense<0.000000e+00> : vector<1xf32>
    %93 = vector.multi_reduction <add>, %92, %cst_31 [1] : vector<1x4xf32> to vector<1xf32>
    %94 = vector.shape_cast %93 : vector<1xf32> to vector<1x1xf32>
    %cst_32 = arith.constant dense<0.000000e+00> : vector<1x16xf32>
    %95 = tpu.matmul %58, %0, %cst_32 {dimension_numbers = #tpu.dot_dimension_numbers<[1], [0], [0], [1], [0, 0, 1, 1], [], []>} : vector<1x16xf32>, vector<16x16xf32>, vector<1x16xf32> -> vector<1x16xf32>
    %96 = vector.broadcast %69 : vector<1x1xf32> to vector<1x16xf32>
    %97 = arith.mulf %96, %95 : vector<1x16xf32>
    %cst_33 = arith.constant dense<0xFF800000> : vector<1xf32>
    %98 = vector.multi_reduction <maximumf>, %97, %cst_33 [1] : vector<1x16xf32> to vector<1xf32>
    %99 = vector.shape_cast %98 : vector<1xf32> to vector<1x1xf32>
    %100 = vector.broadcast %99 : vector<1x1xf32> to vector<1x16xf32>
    %101 = arith.subf %97, %100 : vector<1x16xf32>
    %102 = math.exp %101 : vector<1x16xf32>
    %cst_34 = arith.constant dense<0.000000e+00> : vector<1xf32>
    %103 = vector.multi_reduction <add>, %102, %cst_34 [1] : vector<1x16xf32> to vector<1xf32>
    %104 = vector.shape_cast %103 : vector<1xf32> to vector<1x1xf32>
    %105 = tpu.reciprocal %104 {approx = true} : vector<1x1xf32> -> vector<1x1xf32>
    %106 = vector.broadcast %105 : vector<1x1xf32> to vector<1x16xf32>
    %107 = arith.mulf %102, %106 : vector<1x16xf32>
    %108 = vector.broadcast %74 : vector<1x1xf32> to vector<1x16xf32>
    %109 = arith.mulf %108, %107 : vector<1x16xf32>
    %cst_35 = arith.constant 1.000000e+00 : f32
    %110 = vector.broadcast %cst_35 : f32 to vector<1x1xf32>
    %111 = arith.subf %110, %74 : vector<1x1xf32>
    %112 = vector.broadcast %111 : vector<1x1xf32> to vector<1x16xf32>
    %113 = arith.mulf %112, %12 : vector<1x16xf32>
    %114 = arith.addf %109, %113 : vector<1x16xf32>
    %cst_36 = arith.constant dense<0.000000e+00> : vector<1x128xf32>
    %115 = tpu.matmul %114, %1, %cst_36 {dimension_numbers = #tpu.dot_dimension_numbers<[1], [0], [0], [1], [0, 0, 1, 1], [], []>} : vector<1x16xf32>, vector<16x128xf32>, vector<1x128xf32> -> vector<1x128xf32>
    %116 = vector.broadcast %15 : f32 to vector<1x1xf32>
    %117 = arith.subf %116, %94 : vector<1x1xf32>
    %c1 = arith.constant 1 : index
    %118 = memref.load %arg0[%c1] : memref<8xf32, #tpu.memory_space<smem>>
    %c1_37 = arith.constant 1 : index
    %119 = memref.load %arg1[%c1_37] : memref<8xf32, #tpu.memory_space<smem>>
    %120 = arith.addf %49, %115 : vector<1x128xf32>
    %121 = vector.broadcast %118 : f32 to vector<1x128xf32>
    %122 = arith.mulf %121, %4 : vector<1x128xf32>
    %123 = arith.addf %120, %122 : vector<1x128xf32>
    %124 = vector.broadcast %117 : vector<1x1xf32> to vector<1x128xf32>
    %125 = arith.mulf %124, %5 : vector<1x128xf32>
    %126 = arith.addf %123, %125 : vector<1x128xf32>
    %127 = arith.addf %126, %6 : vector<1x128xf32>
    %128 = math.tanh %127 : vector<1x128xf32>
    %129 = vector.extract_strided_slice %128 {offsets = [0, 0], sizes = [1, 32], strides = [1, 1]} : vector<1x128xf32> to vector<1x32xf32>
    %cst_38 = arith.constant 1.000000e+00 : f32
    %130 = vector.broadcast %cst_38 : f32 to vector<1x32xf32>
    %131 = arith.addf %130, %129 : vector<1x32xf32>
    %cst_39 = arith.constant 5.000000e-01 : f32
    %132 = vector.broadcast %cst_39 : f32 to vector<1x32xf32>
    %133 = arith.mulf %132, %131 : vector<1x32xf32>
    %134 = vector.extract_strided_slice %128 {offsets = [0, 32], sizes = [1, 32], strides = [1, 1]} : vector<1x128xf32> to vector<1x32xf32>
    %cst_40 = arith.constant 1.000000e+00 : f32
    %135 = vector.broadcast %cst_40 : f32 to vector<1x32xf32>
    %136 = arith.addf %135, %134 : vector<1x32xf32>
    %cst_41 = arith.constant 5.000000e-01 : f32
    %137 = vector.broadcast %cst_41 : f32 to vector<1x32xf32>
    %138 = arith.mulf %137, %136 : vector<1x32xf32>
    %139 = vector.extract_strided_slice %128 {offsets = [0, 64], sizes = [1, 32], strides = [1, 1]} : vector<1x128xf32> to vector<1x32xf32>
    %140 = vector.extract_strided_slice %128 {offsets = [0, 96], sizes = [1, 32], strides = [1, 1]} : vector<1x128xf32> to vector<1x32xf32>
    %cst_42 = arith.constant 1.000000e+00 : f32
    %141 = vector.broadcast %cst_42 : f32 to vector<1x32xf32>
    %142 = arith.addf %141, %140 : vector<1x32xf32>
    %cst_43 = arith.constant 5.000000e-01 : f32
    %143 = vector.broadcast %cst_43 : f32 to vector<1x32xf32>
    %144 = arith.mulf %143, %142 : vector<1x32xf32>
    %145 = arith.mulf %138, %43 : vector<1x32xf32>
    %146 = arith.mulf %133, %139 : vector<1x32xf32>
    %147 = arith.addf %145, %146 : vector<1x32xf32>
    %148 = math.tanh %147 : vector<1x32xf32>
    %149 = arith.mulf %144, %148 : vector<1x32xf32>
    %cst_44 = arith.constant dense<0.000000e+00> : vector<1x256xf32>
    %150 = tpu.matmul %149, %2, %cst_44 {dimension_numbers = #tpu.dot_dimension_numbers<[1], [0], [0], [1], [0, 0, 1, 1], [], []>} : vector<1x32xf32>, vector<32x256xf32>, vector<1x256xf32> -> vector<1x256xf32>
    %151 = vector.extract_strided_slice %150 {offsets = [0, 0], sizes = [1, 128], strides = [1, 1]} : vector<1x256xf32> to vector<1x128xf32>
    %152 = arith.addf %151, %7 : vector<1x128xf32>
    %153 = vector.extract_strided_slice %150 {offsets = [0, 128], sizes = [1, 128], strides = [1, 1]} : vector<1x256xf32> to vector<1x128xf32>
    %154 = math.tanh %152 : vector<1x128xf32>
    %155 = vector.extract_strided_slice %152 {offsets = [0, 0], sizes = [1, 4], strides = [1, 1]} : vector<1x128xf32> to vector<1x4xf32>
    %156 = vector.extract_strided_slice %154 {offsets = [0, 8], sizes = [1, 1], strides = [1, 1]} : vector<1x128xf32> to vector<1x1xf32>
    %cst_45 = arith.constant 1.000000e+00 : f32
    %157 = vector.broadcast %cst_45 : f32 to vector<1x1xf32>
    %158 = arith.addf %157, %156 : vector<1x1xf32>
    %cst_46 = arith.constant 5.000000e-01 : f32
    %159 = vector.broadcast %cst_46 : f32 to vector<1x1xf32>
    %160 = arith.mulf %159, %158 : vector<1x1xf32>
    %161 = vector.extract_strided_slice %154 {offsets = [0, 16], sizes = [1, 4], strides = [1, 1]} : vector<1x128xf32> to vector<1x4xf32>
    %162 = vector.extract_strided_slice %154 {offsets = [0, 32], sizes = [1, 16], strides = [1, 1]} : vector<1x128xf32> to vector<1x16xf32>
    %163 = vector.extract_strided_slice %152 {offsets = [0, 48], sizes = [1, 1], strides = [1, 1]} : vector<1x128xf32> to vector<1x1xf32>
    %cst_47 = arith.constant 0.000000e+00 : f32
    %164 = vector.broadcast %cst_47 : f32 to vector<1x1xf32>
    %165 = arith.maximumf %163, %164 : vector<1x1xf32>
    %166 = math.absf %163 : vector<1x1xf32>
    %cst_48 = arith.constant 0.000000e+00 : f32
    %167 = vector.broadcast %cst_48 : f32 to vector<1x1xf32>
    %168 = arith.subf %167, %166 : vector<1x1xf32>
    %169 = math.exp %168 : vector<1x1xf32>
    %cst_49 = arith.constant 1.000000e+00 : f32
    %170 = vector.broadcast %cst_49 : f32 to vector<1x1xf32>
    %171 = arith.addf %170, %169 : vector<1x1xf32>
    %172 = math.log %171 : vector<1x1xf32>
    %173 = arith.addf %165, %172 : vector<1x1xf32>
    %174 = vector.extract_strided_slice %154 {offsets = [0, 56], sizes = [1, 1], strides = [1, 1]} : vector<1x128xf32> to vector<1x1xf32>
    %cst_50 = arith.constant 1.000000e+00 : f32
    %175 = vector.broadcast %cst_50 : f32 to vector<1x1xf32>
    %176 = arith.addf %175, %174 : vector<1x1xf32>
    %cst_51 = arith.constant 5.000000e-01 : f32
    %177 = vector.broadcast %cst_51 : f32 to vector<1x1xf32>
    %178 = arith.mulf %177, %176 : vector<1x1xf32>
    %cst_52 = arith.constant dense<0xFF800000> : vector<1xf32>
    %179 = vector.multi_reduction <maximumf>, %155, %cst_52 [1] : vector<1x4xf32> to vector<1xf32>
    %180 = vector.shape_cast %179 : vector<1xf32> to vector<1x1xf32>
    %181 = vector.broadcast %180 : vector<1x1xf32> to vector<1x4xf32>
    %182 = arith.subf %155, %181 : vector<1x4xf32>
    %183 = math.exp %182 : vector<1x4xf32>
    %cst_53 = arith.constant dense<0.000000e+00> : vector<1xf32>
    %184 = vector.multi_reduction <add>, %183, %cst_53 [1] : vector<1x4xf32> to vector<1xf32>
    %185 = vector.shape_cast %184 : vector<1xf32> to vector<1x1xf32>
    %186 = tpu.reciprocal %185 {approx = true} : vector<1x1xf32> -> vector<1x1xf32>
    %187 = vector.broadcast %186 : vector<1x1xf32> to vector<1x4xf32>
    %188 = arith.mulf %183, %187 : vector<1x4xf32>
    %189 = vector.broadcast %160 : vector<1x1xf32> to vector<1x4xf32>
    %190 = arith.mulf %188, %189 : vector<1x4xf32>
    %cst_54 = arith.constant 1.000000e+00 : f32
    %191 = vector.broadcast %cst_54 : f32 to vector<1x1xf32>
    %192 = arith.subf %191, %160 : vector<1x1xf32>
    %193 = vector.broadcast %192 : vector<1x1xf32> to vector<1x4xf32>
    %194 = arith.mulf %193, %91 : vector<1x4xf32>
    %195 = arith.addf %190, %194 : vector<1x4xf32>
    %196 = arith.mulf %195, %161 : vector<1x4xf32>
    %cst_55 = arith.constant dense<0.000000e+00> : vector<1xf32>
    %197 = vector.multi_reduction <add>, %196, %cst_55 [1] : vector<1x4xf32> to vector<1xf32>
    %198 = vector.shape_cast %197 : vector<1xf32> to vector<1x1xf32>
    %cst_56 = arith.constant dense<0.000000e+00> : vector<1x16xf32>
    %199 = tpu.matmul %162, %0, %cst_56 {dimension_numbers = #tpu.dot_dimension_numbers<[1], [0], [0], [1], [0, 0, 1, 1], [], []>} : vector<1x16xf32>, vector<16x16xf32>, vector<1x16xf32> -> vector<1x16xf32>
    %200 = vector.broadcast %173 : vector<1x1xf32> to vector<1x16xf32>
    %201 = arith.mulf %200, %199 : vector<1x16xf32>
    %cst_57 = arith.constant dense<0xFF800000> : vector<1xf32>
    %202 = vector.multi_reduction <maximumf>, %201, %cst_57 [1] : vector<1x16xf32> to vector<1xf32>
    %203 = vector.shape_cast %202 : vector<1xf32> to vector<1x1xf32>
    %204 = vector.broadcast %203 : vector<1x1xf32> to vector<1x16xf32>
    %205 = arith.subf %201, %204 : vector<1x16xf32>
    %206 = math.exp %205 : vector<1x16xf32>
    %cst_58 = arith.constant dense<0.000000e+00> : vector<1xf32>
    %207 = vector.multi_reduction <add>, %206, %cst_58 [1] : vector<1x16xf32> to vector<1xf32>
    %208 = vector.shape_cast %207 : vector<1xf32> to vector<1x1xf32>
    %209 = tpu.reciprocal %208 {approx = true} : vector<1x1xf32> -> vector<1x1xf32>
    %210 = vector.broadcast %209 : vector<1x1xf32> to vector<1x16xf32>
    %211 = arith.mulf %206, %210 : vector<1x16xf32>
    %212 = vector.broadcast %178 : vector<1x1xf32> to vector<1x16xf32>
    %213 = arith.mulf %212, %211 : vector<1x16xf32>
    %cst_59 = arith.constant 1.000000e+00 : f32
    %214 = vector.broadcast %cst_59 : f32 to vector<1x1xf32>
    %215 = arith.subf %214, %178 : vector<1x1xf32>
    %216 = vector.broadcast %215 : vector<1x1xf32> to vector<1x16xf32>
    %217 = arith.mulf %216, %114 : vector<1x16xf32>
    %218 = arith.addf %213, %217 : vector<1x16xf32>
    %cst_60 = arith.constant dense<0.000000e+00> : vector<1x128xf32>
    %219 = tpu.matmul %218, %1, %cst_60 {dimension_numbers = #tpu.dot_dimension_numbers<[1], [0], [0], [1], [0, 0, 1, 1], [], []>} : vector<1x16xf32>, vector<16x128xf32>, vector<1x128xf32> -> vector<1x128xf32>
    %220 = vector.broadcast %119 : f32 to vector<1x1xf32>
    %221 = arith.subf %220, %198 : vector<1x1xf32>
    %c2 = arith.constant 2 : index
    %222 = memref.load %arg0[%c2] : memref<8xf32, #tpu.memory_space<smem>>
    %c2_61 = arith.constant 2 : index
    %223 = memref.load %arg1[%c2_61] : memref<8xf32, #tpu.memory_space<smem>>
    %224 = arith.addf %153, %219 : vector<1x128xf32>
    %225 = vector.broadcast %222 : f32 to vector<1x128xf32>
    %226 = arith.mulf %225, %4 : vector<1x128xf32>
    %227 = arith.addf %224, %226 : vector<1x128xf32>
    %228 = vector.broadcast %221 : vector<1x1xf32> to vector<1x128xf32>
    %229 = arith.mulf %228, %5 : vector<1x128xf32>
    %230 = arith.addf %227, %229 : vector<1x128xf32>
    %231 = arith.addf %230, %6 : vector<1x128xf32>
    %232 = math.tanh %231 : vector<1x128xf32>
    %233 = vector.extract_strided_slice %232 {offsets = [0, 0], sizes = [1, 32], strides = [1, 1]} : vector<1x128xf32> to vector<1x32xf32>
    %cst_62 = arith.constant 1.000000e+00 : f32
    %234 = vector.broadcast %cst_62 : f32 to vector<1x32xf32>
    %235 = arith.addf %234, %233 : vector<1x32xf32>
    %cst_63 = arith.constant 5.000000e-01 : f32
    %236 = vector.broadcast %cst_63 : f32 to vector<1x32xf32>
    %237 = arith.mulf %236, %235 : vector<1x32xf32>
    %238 = vector.extract_strided_slice %232 {offsets = [0, 32], sizes = [1, 32], strides = [1, 1]} : vector<1x128xf32> to vector<1x32xf32>
    %cst_64 = arith.constant 1.000000e+00 : f32
    %239 = vector.broadcast %cst_64 : f32 to vector<1x32xf32>
    %240 = arith.addf %239, %238 : vector<1x32xf32>
    %cst_65 = arith.constant 5.000000e-01 : f32
    %241 = vector.broadcast %cst_65 : f32 to vector<1x32xf32>
    %242 = arith.mulf %241, %240 : vector<1x32xf32>
    %243 = vector.extract_strided_slice %232 {offsets = [0, 64], sizes = [1, 32], strides = [1, 1]} : vector<1x128xf32> to vector<1x32xf32>
    %244 = vector.extract_strided_slice %232 {offsets = [0, 96], sizes = [1, 32], strides = [1, 1]} : vector<1x128xf32> to vector<1x32xf32>
    %cst_66 = arith.constant 1.000000e+00 : f32
    %245 = vector.broadcast %cst_66 : f32 to vector<1x32xf32>
    %246 = arith.addf %245, %244 : vector<1x32xf32>
    %cst_67 = arith.constant 5.000000e-01 : f32
    %247 = vector.broadcast %cst_67 : f32 to vector<1x32xf32>
    %248 = arith.mulf %247, %246 : vector<1x32xf32>
    %249 = arith.mulf %242, %147 : vector<1x32xf32>
    %250 = arith.mulf %237, %243 : vector<1x32xf32>
    %251 = arith.addf %249, %250 : vector<1x32xf32>
    %252 = math.tanh %251 : vector<1x32xf32>
    %253 = arith.mulf %248, %252 : vector<1x32xf32>
    %cst_68 = arith.constant dense<0.000000e+00> : vector<1x256xf32>
    %254 = tpu.matmul %253, %2, %cst_68 {dimension_numbers = #tpu.dot_dimension_numbers<[1], [0], [0], [1], [0, 0, 1, 1], [], []>} : vector<1x32xf32>, vector<32x256xf32>, vector<1x256xf32> -> vector<1x256xf32>
    %255 = vector.extract_strided_slice %254 {offsets = [0, 0], sizes = [1, 128], strides = [1, 1]} : vector<1x256xf32> to vector<1x128xf32>
    %256 = arith.addf %255, %7 : vector<1x128xf32>
    %257 = vector.extract_strided_slice %254 {offsets = [0, 128], sizes = [1, 128], strides = [1, 1]} : vector<1x256xf32> to vector<1x128xf32>
    %258 = math.tanh %256 : vector<1x128xf32>
    %259 = vector.extract_strided_slice %256 {offsets = [0, 0], sizes = [1, 4], strides = [1, 1]} : vector<1x128xf32> to vector<1x4xf32>
    %260 = vector.extract_strided_slice %258 {offsets = [0, 8], sizes = [1, 1], strides = [1, 1]} : vector<1x128xf32> to vector<1x1xf32>
    %cst_69 = arith.constant 1.000000e+00 : f32
    %261 = vector.broadcast %cst_69 : f32 to vector<1x1xf32>
    %262 = arith.addf %261, %260 : vector<1x1xf32>
    %cst_70 = arith.constant 5.000000e-01 : f32
    %263 = vector.broadcast %cst_70 : f32 to vector<1x1xf32>
    %264 = arith.mulf %263, %262 : vector<1x1xf32>
    %265 = vector.extract_strided_slice %258 {offsets = [0, 16], sizes = [1, 4], strides = [1, 1]} : vector<1x128xf32> to vector<1x4xf32>
    %266 = vector.extract_strided_slice %258 {offsets = [0, 32], sizes = [1, 16], strides = [1, 1]} : vector<1x128xf32> to vector<1x16xf32>
    %267 = vector.extract_strided_slice %256 {offsets = [0, 48], sizes = [1, 1], strides = [1, 1]} : vector<1x128xf32> to vector<1x1xf32>
    %cst_71 = arith.constant 0.000000e+00 : f32
    %268 = vector.broadcast %cst_71 : f32 to vector<1x1xf32>
    %269 = arith.maximumf %267, %268 : vector<1x1xf32>
    %270 = math.absf %267 : vector<1x1xf32>
    %cst_72 = arith.constant 0.000000e+00 : f32
    %271 = vector.broadcast %cst_72 : f32 to vector<1x1xf32>
    %272 = arith.subf %271, %270 : vector<1x1xf32>
    %273 = math.exp %272 : vector<1x1xf32>
    %cst_73 = arith.constant 1.000000e+00 : f32
    %274 = vector.broadcast %cst_73 : f32 to vector<1x1xf32>
    %275 = arith.addf %274, %273 : vector<1x1xf32>
    %276 = math.log %275 : vector<1x1xf32>
    %277 = arith.addf %269, %276 : vector<1x1xf32>
    %278 = vector.extract_strided_slice %258 {offsets = [0, 56], sizes = [1, 1], strides = [1, 1]} : vector<1x128xf32> to vector<1x1xf32>
    %cst_74 = arith.constant 1.000000e+00 : f32
    %279 = vector.broadcast %cst_74 : f32 to vector<1x1xf32>
    %280 = arith.addf %279, %278 : vector<1x1xf32>
    %cst_75 = arith.constant 5.000000e-01 : f32
    %281 = vector.broadcast %cst_75 : f32 to vector<1x1xf32>
    %282 = arith.mulf %281, %280 : vector<1x1xf32>
    %cst_76 = arith.constant dense<0xFF800000> : vector<1xf32>
    %283 = vector.multi_reduction <maximumf>, %259, %cst_76 [1] : vector<1x4xf32> to vector<1xf32>
    %284 = vector.shape_cast %283 : vector<1xf32> to vector<1x1xf32>
    %285 = vector.broadcast %284 : vector<1x1xf32> to vector<1x4xf32>
    %286 = arith.subf %259, %285 : vector<1x4xf32>
    %287 = math.exp %286 : vector<1x4xf32>
    %cst_77 = arith.constant dense<0.000000e+00> : vector<1xf32>
    %288 = vector.multi_reduction <add>, %287, %cst_77 [1] : vector<1x4xf32> to vector<1xf32>
    %289 = vector.shape_cast %288 : vector<1xf32> to vector<1x1xf32>
    %290 = tpu.reciprocal %289 {approx = true} : vector<1x1xf32> -> vector<1x1xf32>
    %291 = vector.broadcast %290 : vector<1x1xf32> to vector<1x4xf32>
    %292 = arith.mulf %287, %291 : vector<1x4xf32>
    %293 = vector.broadcast %264 : vector<1x1xf32> to vector<1x4xf32>
    %294 = arith.mulf %292, %293 : vector<1x4xf32>
    %cst_78 = arith.constant 1.000000e+00 : f32
    %295 = vector.broadcast %cst_78 : f32 to vector<1x1xf32>
    %296 = arith.subf %295, %264 : vector<1x1xf32>
    %297 = vector.broadcast %296 : vector<1x1xf32> to vector<1x4xf32>
    %298 = arith.mulf %297, %195 : vector<1x4xf32>
    %299 = arith.addf %294, %298 : vector<1x4xf32>
    %300 = arith.mulf %299, %265 : vector<1x4xf32>
    %cst_79 = arith.constant dense<0.000000e+00> : vector<1xf32>
    %301 = vector.multi_reduction <add>, %300, %cst_79 [1] : vector<1x4xf32> to vector<1xf32>
    %302 = vector.shape_cast %301 : vector<1xf32> to vector<1x1xf32>
    %cst_80 = arith.constant dense<0.000000e+00> : vector<1x16xf32>
    %303 = tpu.matmul %266, %0, %cst_80 {dimension_numbers = #tpu.dot_dimension_numbers<[1], [0], [0], [1], [0, 0, 1, 1], [], []>} : vector<1x16xf32>, vector<16x16xf32>, vector<1x16xf32> -> vector<1x16xf32>
    %304 = vector.broadcast %277 : vector<1x1xf32> to vector<1x16xf32>
    %305 = arith.mulf %304, %303 : vector<1x16xf32>
    %cst_81 = arith.constant dense<0xFF800000> : vector<1xf32>
    %306 = vector.multi_reduction <maximumf>, %305, %cst_81 [1] : vector<1x16xf32> to vector<1xf32>
    %307 = vector.shape_cast %306 : vector<1xf32> to vector<1x1xf32>
    %308 = vector.broadcast %307 : vector<1x1xf32> to vector<1x16xf32>
    %309 = arith.subf %305, %308 : vector<1x16xf32>
    %310 = math.exp %309 : vector<1x16xf32>
    %cst_82 = arith.constant dense<0.000000e+00> : vector<1xf32>
    %311 = vector.multi_reduction <add>, %310, %cst_82 [1] : vector<1x16xf32> to vector<1xf32>
    %312 = vector.shape_cast %311 : vector<1xf32> to vector<1x1xf32>
    %313 = tpu.reciprocal %312 {approx = true} : vector<1x1xf32> -> vector<1x1xf32>
    %314 = vector.broadcast %313 : vector<1x1xf32> to vector<1x16xf32>
    %315 = arith.mulf %310, %314 : vector<1x16xf32>
    %316 = vector.broadcast %282 : vector<1x1xf32> to vector<1x16xf32>
    %317 = arith.mulf %316, %315 : vector<1x16xf32>
    %cst_83 = arith.constant 1.000000e+00 : f32
    %318 = vector.broadcast %cst_83 : f32 to vector<1x1xf32>
    %319 = arith.subf %318, %282 : vector<1x1xf32>
    %320 = vector.broadcast %319 : vector<1x1xf32> to vector<1x16xf32>
    %321 = arith.mulf %320, %218 : vector<1x16xf32>
    %322 = arith.addf %317, %321 : vector<1x16xf32>
    %cst_84 = arith.constant dense<0.000000e+00> : vector<1x128xf32>
    %323 = tpu.matmul %322, %1, %cst_84 {dimension_numbers = #tpu.dot_dimension_numbers<[1], [0], [0], [1], [0, 0, 1, 1], [], []>} : vector<1x16xf32>, vector<16x128xf32>, vector<1x128xf32> -> vector<1x128xf32>
    %324 = vector.broadcast %223 : f32 to vector<1x1xf32>
    %325 = arith.subf %324, %302 : vector<1x1xf32>
    %c3 = arith.constant 3 : index
    %326 = memref.load %arg0[%c3] : memref<8xf32, #tpu.memory_space<smem>>
    %c3_85 = arith.constant 3 : index
    %327 = memref.load %arg1[%c3_85] : memref<8xf32, #tpu.memory_space<smem>>
    %328 = arith.addf %257, %323 : vector<1x128xf32>
    %329 = vector.broadcast %326 : f32 to vector<1x128xf32>
    %330 = arith.mulf %329, %4 : vector<1x128xf32>
    %331 = arith.addf %328, %330 : vector<1x128xf32>
    %332 = vector.broadcast %325 : vector<1x1xf32> to vector<1x128xf32>
    %333 = arith.mulf %332, %5 : vector<1x128xf32>
    %334 = arith.addf %331, %333 : vector<1x128xf32>
    %335 = arith.addf %334, %6 : vector<1x128xf32>
    %336 = math.tanh %335 : vector<1x128xf32>
    %337 = vector.extract_strided_slice %336 {offsets = [0, 0], sizes = [1, 32], strides = [1, 1]} : vector<1x128xf32> to vector<1x32xf32>
    %cst_86 = arith.constant 1.000000e+00 : f32
    %338 = vector.broadcast %cst_86 : f32 to vector<1x32xf32>
    %339 = arith.addf %338, %337 : vector<1x32xf32>
    %cst_87 = arith.constant 5.000000e-01 : f32
    %340 = vector.broadcast %cst_87 : f32 to vector<1x32xf32>
    %341 = arith.mulf %340, %339 : vector<1x32xf32>
    %342 = vector.extract_strided_slice %336 {offsets = [0, 32], sizes = [1, 32], strides = [1, 1]} : vector<1x128xf32> to vector<1x32xf32>
    %cst_88 = arith.constant 1.000000e+00 : f32
    %343 = vector.broadcast %cst_88 : f32 to vector<1x32xf32>
    %344 = arith.addf %343, %342 : vector<1x32xf32>
    %cst_89 = arith.constant 5.000000e-01 : f32
    %345 = vector.broadcast %cst_89 : f32 to vector<1x32xf32>
    %346 = arith.mulf %345, %344 : vector<1x32xf32>
    %347 = vector.extract_strided_slice %336 {offsets = [0, 64], sizes = [1, 32], strides = [1, 1]} : vector<1x128xf32> to vector<1x32xf32>
    %348 = vector.extract_strided_slice %336 {offsets = [0, 96], sizes = [1, 32], strides = [1, 1]} : vector<1x128xf32> to vector<1x32xf32>
    %cst_90 = arith.constant 1.000000e+00 : f32
    %349 = vector.broadcast %cst_90 : f32 to vector<1x32xf32>
    %350 = arith.addf %349, %348 : vector<1x32xf32>
    %cst_91 = arith.constant 5.000000e-01 : f32
    %351 = vector.broadcast %cst_91 : f32 to vector<1x32xf32>
    %352 = arith.mulf %351, %350 : vector<1x32xf32>
    %353 = arith.mulf %346, %251 : vector<1x32xf32>
    %354 = arith.mulf %341, %347 : vector<1x32xf32>
    %355 = arith.addf %353, %354 : vector<1x32xf32>
    %356 = math.tanh %355 : vector<1x32xf32>
    %357 = arith.mulf %352, %356 : vector<1x32xf32>
    %cst_92 = arith.constant dense<0.000000e+00> : vector<1x256xf32>
    %358 = tpu.matmul %357, %2, %cst_92 {dimension_numbers = #tpu.dot_dimension_numbers<[1], [0], [0], [1], [0, 0, 1, 1], [], []>} : vector<1x32xf32>, vector<32x256xf32>, vector<1x256xf32> -> vector<1x256xf32>
    %359 = vector.extract_strided_slice %358 {offsets = [0, 0], sizes = [1, 128], strides = [1, 1]} : vector<1x256xf32> to vector<1x128xf32>
    %360 = arith.addf %359, %7 : vector<1x128xf32>
    %361 = vector.extract_strided_slice %358 {offsets = [0, 128], sizes = [1, 128], strides = [1, 1]} : vector<1x256xf32> to vector<1x128xf32>
    %362 = math.tanh %360 : vector<1x128xf32>
    %363 = vector.extract_strided_slice %360 {offsets = [0, 0], sizes = [1, 4], strides = [1, 1]} : vector<1x128xf32> to vector<1x4xf32>
    %364 = vector.extract_strided_slice %362 {offsets = [0, 8], sizes = [1, 1], strides = [1, 1]} : vector<1x128xf32> to vector<1x1xf32>
    %cst_93 = arith.constant 1.000000e+00 : f32
    %365 = vector.broadcast %cst_93 : f32 to vector<1x1xf32>
    %366 = arith.addf %365, %364 : vector<1x1xf32>
    %cst_94 = arith.constant 5.000000e-01 : f32
    %367 = vector.broadcast %cst_94 : f32 to vector<1x1xf32>
    %368 = arith.mulf %367, %366 : vector<1x1xf32>
    %369 = vector.extract_strided_slice %362 {offsets = [0, 16], sizes = [1, 4], strides = [1, 1]} : vector<1x128xf32> to vector<1x4xf32>
    %370 = vector.extract_strided_slice %362 {offsets = [0, 32], sizes = [1, 16], strides = [1, 1]} : vector<1x128xf32> to vector<1x16xf32>
    %371 = vector.extract_strided_slice %360 {offsets = [0, 48], sizes = [1, 1], strides = [1, 1]} : vector<1x128xf32> to vector<1x1xf32>
    %cst_95 = arith.constant 0.000000e+00 : f32
    %372 = vector.broadcast %cst_95 : f32 to vector<1x1xf32>
    %373 = arith.maximumf %371, %372 : vector<1x1xf32>
    %374 = math.absf %371 : vector<1x1xf32>
    %cst_96 = arith.constant 0.000000e+00 : f32
    %375 = vector.broadcast %cst_96 : f32 to vector<1x1xf32>
    %376 = arith.subf %375, %374 : vector<1x1xf32>
    %377 = math.exp %376 : vector<1x1xf32>
    %cst_97 = arith.constant 1.000000e+00 : f32
    %378 = vector.broadcast %cst_97 : f32 to vector<1x1xf32>
    %379 = arith.addf %378, %377 : vector<1x1xf32>
    %380 = math.log %379 : vector<1x1xf32>
    %381 = arith.addf %373, %380 : vector<1x1xf32>
    %382 = vector.extract_strided_slice %362 {offsets = [0, 56], sizes = [1, 1], strides = [1, 1]} : vector<1x128xf32> to vector<1x1xf32>
    %cst_98 = arith.constant 1.000000e+00 : f32
    %383 = vector.broadcast %cst_98 : f32 to vector<1x1xf32>
    %384 = arith.addf %383, %382 : vector<1x1xf32>
    %cst_99 = arith.constant 5.000000e-01 : f32
    %385 = vector.broadcast %cst_99 : f32 to vector<1x1xf32>
    %386 = arith.mulf %385, %384 : vector<1x1xf32>
    %cst_100 = arith.constant dense<0xFF800000> : vector<1xf32>
    %387 = vector.multi_reduction <maximumf>, %363, %cst_100 [1] : vector<1x4xf32> to vector<1xf32>
    %388 = vector.shape_cast %387 : vector<1xf32> to vector<1x1xf32>
    %389 = vector.broadcast %388 : vector<1x1xf32> to vector<1x4xf32>
    %390 = arith.subf %363, %389 : vector<1x4xf32>
    %391 = math.exp %390 : vector<1x4xf32>
    %cst_101 = arith.constant dense<0.000000e+00> : vector<1xf32>
    %392 = vector.multi_reduction <add>, %391, %cst_101 [1] : vector<1x4xf32> to vector<1xf32>
    %393 = vector.shape_cast %392 : vector<1xf32> to vector<1x1xf32>
    %394 = tpu.reciprocal %393 {approx = true} : vector<1x1xf32> -> vector<1x1xf32>
    %395 = vector.broadcast %394 : vector<1x1xf32> to vector<1x4xf32>
    %396 = arith.mulf %391, %395 : vector<1x4xf32>
    %397 = vector.broadcast %368 : vector<1x1xf32> to vector<1x4xf32>
    %398 = arith.mulf %396, %397 : vector<1x4xf32>
    %cst_102 = arith.constant 1.000000e+00 : f32
    %399 = vector.broadcast %cst_102 : f32 to vector<1x1xf32>
    %400 = arith.subf %399, %368 : vector<1x1xf32>
    %401 = vector.broadcast %400 : vector<1x1xf32> to vector<1x4xf32>
    %402 = arith.mulf %401, %299 : vector<1x4xf32>
    %403 = arith.addf %398, %402 : vector<1x4xf32>
    %404 = arith.mulf %403, %369 : vector<1x4xf32>
    %cst_103 = arith.constant dense<0.000000e+00> : vector<1xf32>
    %405 = vector.multi_reduction <add>, %404, %cst_103 [1] : vector<1x4xf32> to vector<1xf32>
    %406 = vector.shape_cast %405 : vector<1xf32> to vector<1x1xf32>
    %cst_104 = arith.constant dense<0.000000e+00> : vector<1x16xf32>
    %407 = tpu.matmul %370, %0, %cst_104 {dimension_numbers = #tpu.dot_dimension_numbers<[1], [0], [0], [1], [0, 0, 1, 1], [], []>} : vector<1x16xf32>, vector<16x16xf32>, vector<1x16xf32> -> vector<1x16xf32>
    %408 = vector.broadcast %381 : vector<1x1xf32> to vector<1x16xf32>
    %409 = arith.mulf %408, %407 : vector<1x16xf32>
    %cst_105 = arith.constant dense<0xFF800000> : vector<1xf32>
    %410 = vector.multi_reduction <maximumf>, %409, %cst_105 [1] : vector<1x16xf32> to vector<1xf32>
    %411 = vector.shape_cast %410 : vector<1xf32> to vector<1x1xf32>
    %412 = vector.broadcast %411 : vector<1x1xf32> to vector<1x16xf32>
    %413 = arith.subf %409, %412 : vector<1x16xf32>
    %414 = math.exp %413 : vector<1x16xf32>
    %cst_106 = arith.constant dense<0.000000e+00> : vector<1xf32>
    %415 = vector.multi_reduction <add>, %414, %cst_106 [1] : vector<1x16xf32> to vector<1xf32>
    %416 = vector.shape_cast %415 : vector<1xf32> to vector<1x1xf32>
    %417 = tpu.reciprocal %416 {approx = true} : vector<1x1xf32> -> vector<1x1xf32>
    %418 = vector.broadcast %417 : vector<1x1xf32> to vector<1x16xf32>
    %419 = arith.mulf %414, %418 : vector<1x16xf32>
    %420 = vector.broadcast %386 : vector<1x1xf32> to vector<1x16xf32>
    %421 = arith.mulf %420, %419 : vector<1x16xf32>
    %cst_107 = arith.constant 1.000000e+00 : f32
    %422 = vector.broadcast %cst_107 : f32 to vector<1x1xf32>
    %423 = arith.subf %422, %386 : vector<1x1xf32>
    %424 = vector.broadcast %423 : vector<1x1xf32> to vector<1x16xf32>
    %425 = arith.mulf %424, %322 : vector<1x16xf32>
    %426 = arith.addf %421, %425 : vector<1x16xf32>
    %cst_108 = arith.constant dense<0.000000e+00> : vector<1x128xf32>
    %427 = tpu.matmul %426, %1, %cst_108 {dimension_numbers = #tpu.dot_dimension_numbers<[1], [0], [0], [1], [0, 0, 1, 1], [], []>} : vector<1x16xf32>, vector<16x128xf32>, vector<1x128xf32> -> vector<1x128xf32>
    %428 = vector.broadcast %327 : f32 to vector<1x1xf32>
    %429 = arith.subf %428, %406 : vector<1x1xf32>
    %c4 = arith.constant 4 : index
    %430 = memref.load %arg0[%c4] : memref<8xf32, #tpu.memory_space<smem>>
    %c4_109 = arith.constant 4 : index
    %431 = memref.load %arg1[%c4_109] : memref<8xf32, #tpu.memory_space<smem>>
    %432 = arith.addf %361, %427 : vector<1x128xf32>
    %433 = vector.broadcast %430 : f32 to vector<1x128xf32>
    %434 = arith.mulf %433, %4 : vector<1x128xf32>
    %435 = arith.addf %432, %434 : vector<1x128xf32>
    %436 = vector.broadcast %429 : vector<1x1xf32> to vector<1x128xf32>
    %437 = arith.mulf %436, %5 : vector<1x128xf32>
    %438 = arith.addf %435, %437 : vector<1x128xf32>
    %439 = arith.addf %438, %6 : vector<1x128xf32>
    %440 = math.tanh %439 : vector<1x128xf32>
    %441 = vector.extract_strided_slice %440 {offsets = [0, 0], sizes = [1, 32], strides = [1, 1]} : vector<1x128xf32> to vector<1x32xf32>
    %cst_110 = arith.constant 1.000000e+00 : f32
    %442 = vector.broadcast %cst_110 : f32 to vector<1x32xf32>
    %443 = arith.addf %442, %441 : vector<1x32xf32>
    %cst_111 = arith.constant 5.000000e-01 : f32
    %444 = vector.broadcast %cst_111 : f32 to vector<1x32xf32>
    %445 = arith.mulf %444, %443 : vector<1x32xf32>
    %446 = vector.extract_strided_slice %440 {offsets = [0, 32], sizes = [1, 32], strides = [1, 1]} : vector<1x128xf32> to vector<1x32xf32>
    %cst_112 = arith.constant 1.000000e+00 : f32
    %447 = vector.broadcast %cst_112 : f32 to vector<1x32xf32>
    %448 = arith.addf %447, %446 : vector<1x32xf32>
    %cst_113 = arith.constant 5.000000e-01 : f32
    %449 = vector.broadcast %cst_113 : f32 to vector<1x32xf32>
    %450 = arith.mulf %449, %448 : vector<1x32xf32>
    %451 = vector.extract_strided_slice %440 {offsets = [0, 64], sizes = [1, 32], strides = [1, 1]} : vector<1x128xf32> to vector<1x32xf32>
    %452 = vector.extract_strided_slice %440 {offsets = [0, 96], sizes = [1, 32], strides = [1, 1]} : vector<1x128xf32> to vector<1x32xf32>
    %cst_114 = arith.constant 1.000000e+00 : f32
    %453 = vector.broadcast %cst_114 : f32 to vector<1x32xf32>
    %454 = arith.addf %453, %452 : vector<1x32xf32>
    %cst_115 = arith.constant 5.000000e-01 : f32
    %455 = vector.broadcast %cst_115 : f32 to vector<1x32xf32>
    %456 = arith.mulf %455, %454 : vector<1x32xf32>
    %457 = arith.mulf %450, %355 : vector<1x32xf32>
    %458 = arith.mulf %445, %451 : vector<1x32xf32>
    %459 = arith.addf %457, %458 : vector<1x32xf32>
    %460 = math.tanh %459 : vector<1x32xf32>
    %461 = arith.mulf %456, %460 : vector<1x32xf32>
    %cst_116 = arith.constant dense<0.000000e+00> : vector<1x256xf32>
    %462 = tpu.matmul %461, %2, %cst_116 {dimension_numbers = #tpu.dot_dimension_numbers<[1], [0], [0], [1], [0, 0, 1, 1], [], []>} : vector<1x32xf32>, vector<32x256xf32>, vector<1x256xf32> -> vector<1x256xf32>
    %463 = vector.extract_strided_slice %462 {offsets = [0, 0], sizes = [1, 128], strides = [1, 1]} : vector<1x256xf32> to vector<1x128xf32>
    %464 = arith.addf %463, %7 : vector<1x128xf32>
    %465 = vector.extract_strided_slice %462 {offsets = [0, 128], sizes = [1, 128], strides = [1, 1]} : vector<1x256xf32> to vector<1x128xf32>
    %466 = math.tanh %464 : vector<1x128xf32>
    %467 = vector.extract_strided_slice %464 {offsets = [0, 0], sizes = [1, 4], strides = [1, 1]} : vector<1x128xf32> to vector<1x4xf32>
    %468 = vector.extract_strided_slice %466 {offsets = [0, 8], sizes = [1, 1], strides = [1, 1]} : vector<1x128xf32> to vector<1x1xf32>
    %cst_117 = arith.constant 1.000000e+00 : f32
    %469 = vector.broadcast %cst_117 : f32 to vector<1x1xf32>
    %470 = arith.addf %469, %468 : vector<1x1xf32>
    %cst_118 = arith.constant 5.000000e-01 : f32
    %471 = vector.broadcast %cst_118 : f32 to vector<1x1xf32>
    %472 = arith.mulf %471, %470 : vector<1x1xf32>
    %473 = vector.extract_strided_slice %466 {offsets = [0, 16], sizes = [1, 4], strides = [1, 1]} : vector<1x128xf32> to vector<1x4xf32>
    %474 = vector.extract_strided_slice %466 {offsets = [0, 32], sizes = [1, 16], strides = [1, 1]} : vector<1x128xf32> to vector<1x16xf32>
    %475 = vector.extract_strided_slice %464 {offsets = [0, 48], sizes = [1, 1], strides = [1, 1]} : vector<1x128xf32> to vector<1x1xf32>
    %cst_119 = arith.constant 0.000000e+00 : f32
    %476 = vector.broadcast %cst_119 : f32 to vector<1x1xf32>
    %477 = arith.maximumf %475, %476 : vector<1x1xf32>
    %478 = math.absf %475 : vector<1x1xf32>
    %cst_120 = arith.constant 0.000000e+00 : f32
    %479 = vector.broadcast %cst_120 : f32 to vector<1x1xf32>
    %480 = arith.subf %479, %478 : vector<1x1xf32>
    %481 = math.exp %480 : vector<1x1xf32>
    %cst_121 = arith.constant 1.000000e+00 : f32
    %482 = vector.broadcast %cst_121 : f32 to vector<1x1xf32>
    %483 = arith.addf %482, %481 : vector<1x1xf32>
    %484 = math.log %483 : vector<1x1xf32>
    %485 = arith.addf %477, %484 : vector<1x1xf32>
    %486 = vector.extract_strided_slice %466 {offsets = [0, 56], sizes = [1, 1], strides = [1, 1]} : vector<1x128xf32> to vector<1x1xf32>
    %cst_122 = arith.constant 1.000000e+00 : f32
    %487 = vector.broadcast %cst_122 : f32 to vector<1x1xf32>
    %488 = arith.addf %487, %486 : vector<1x1xf32>
    %cst_123 = arith.constant 5.000000e-01 : f32
    %489 = vector.broadcast %cst_123 : f32 to vector<1x1xf32>
    %490 = arith.mulf %489, %488 : vector<1x1xf32>
    %cst_124 = arith.constant dense<0xFF800000> : vector<1xf32>
    %491 = vector.multi_reduction <maximumf>, %467, %cst_124 [1] : vector<1x4xf32> to vector<1xf32>
    %492 = vector.shape_cast %491 : vector<1xf32> to vector<1x1xf32>
    %493 = vector.broadcast %492 : vector<1x1xf32> to vector<1x4xf32>
    %494 = arith.subf %467, %493 : vector<1x4xf32>
    %495 = math.exp %494 : vector<1x4xf32>
    %cst_125 = arith.constant dense<0.000000e+00> : vector<1xf32>
    %496 = vector.multi_reduction <add>, %495, %cst_125 [1] : vector<1x4xf32> to vector<1xf32>
    %497 = vector.shape_cast %496 : vector<1xf32> to vector<1x1xf32>
    %498 = tpu.reciprocal %497 {approx = true} : vector<1x1xf32> -> vector<1x1xf32>
    %499 = vector.broadcast %498 : vector<1x1xf32> to vector<1x4xf32>
    %500 = arith.mulf %495, %499 : vector<1x4xf32>
    %501 = vector.broadcast %472 : vector<1x1xf32> to vector<1x4xf32>
    %502 = arith.mulf %500, %501 : vector<1x4xf32>
    %cst_126 = arith.constant 1.000000e+00 : f32
    %503 = vector.broadcast %cst_126 : f32 to vector<1x1xf32>
    %504 = arith.subf %503, %472 : vector<1x1xf32>
    %505 = vector.broadcast %504 : vector<1x1xf32> to vector<1x4xf32>
    %506 = arith.mulf %505, %403 : vector<1x4xf32>
    %507 = arith.addf %502, %506 : vector<1x4xf32>
    %508 = arith.mulf %507, %473 : vector<1x4xf32>
    %cst_127 = arith.constant dense<0.000000e+00> : vector<1xf32>
    %509 = vector.multi_reduction <add>, %508, %cst_127 [1] : vector<1x4xf32> to vector<1xf32>
    %510 = vector.shape_cast %509 : vector<1xf32> to vector<1x1xf32>
    %cst_128 = arith.constant dense<0.000000e+00> : vector<1x16xf32>
    %511 = tpu.matmul %474, %0, %cst_128 {dimension_numbers = #tpu.dot_dimension_numbers<[1], [0], [0], [1], [0, 0, 1, 1], [], []>} : vector<1x16xf32>, vector<16x16xf32>, vector<1x16xf32> -> vector<1x16xf32>
    %512 = vector.broadcast %485 : vector<1x1xf32> to vector<1x16xf32>
    %513 = arith.mulf %512, %511 : vector<1x16xf32>
    %cst_129 = arith.constant dense<0xFF800000> : vector<1xf32>
    %514 = vector.multi_reduction <maximumf>, %513, %cst_129 [1] : vector<1x16xf32> to vector<1xf32>
    %515 = vector.shape_cast %514 : vector<1xf32> to vector<1x1xf32>
    %516 = vector.broadcast %515 : vector<1x1xf32> to vector<1x16xf32>
    %517 = arith.subf %513, %516 : vector<1x16xf32>
    %518 = math.exp %517 : vector<1x16xf32>
    %cst_130 = arith.constant dense<0.000000e+00> : vector<1xf32>
    %519 = vector.multi_reduction <add>, %518, %cst_130 [1] : vector<1x16xf32> to vector<1xf32>
    %520 = vector.shape_cast %519 : vector<1xf32> to vector<1x1xf32>
    %521 = tpu.reciprocal %520 {approx = true} : vector<1x1xf32> -> vector<1x1xf32>
    %522 = vector.broadcast %521 : vector<1x1xf32> to vector<1x16xf32>
    %523 = arith.mulf %518, %522 : vector<1x16xf32>
    %524 = vector.broadcast %490 : vector<1x1xf32> to vector<1x16xf32>
    %525 = arith.mulf %524, %523 : vector<1x16xf32>
    %cst_131 = arith.constant 1.000000e+00 : f32
    %526 = vector.broadcast %cst_131 : f32 to vector<1x1xf32>
    %527 = arith.subf %526, %490 : vector<1x1xf32>
    %528 = vector.broadcast %527 : vector<1x1xf32> to vector<1x16xf32>
    %529 = arith.mulf %528, %426 : vector<1x16xf32>
    %530 = arith.addf %525, %529 : vector<1x16xf32>
    %cst_132 = arith.constant dense<0.000000e+00> : vector<1x128xf32>
    %531 = tpu.matmul %530, %1, %cst_132 {dimension_numbers = #tpu.dot_dimension_numbers<[1], [0], [0], [1], [0, 0, 1, 1], [], []>} : vector<1x16xf32>, vector<16x128xf32>, vector<1x128xf32> -> vector<1x128xf32>
    %532 = vector.broadcast %431 : f32 to vector<1x1xf32>
    %533 = arith.subf %532, %510 : vector<1x1xf32>
    %c5 = arith.constant 5 : index
    %534 = memref.load %arg0[%c5] : memref<8xf32, #tpu.memory_space<smem>>
    %c5_133 = arith.constant 5 : index
    %535 = memref.load %arg1[%c5_133] : memref<8xf32, #tpu.memory_space<smem>>
    %536 = arith.addf %465, %531 : vector<1x128xf32>
    %537 = vector.broadcast %534 : f32 to vector<1x128xf32>
    %538 = arith.mulf %537, %4 : vector<1x128xf32>
    %539 = arith.addf %536, %538 : vector<1x128xf32>
    %540 = vector.broadcast %533 : vector<1x1xf32> to vector<1x128xf32>
    %541 = arith.mulf %540, %5 : vector<1x128xf32>
    %542 = arith.addf %539, %541 : vector<1x128xf32>
    %543 = arith.addf %542, %6 : vector<1x128xf32>
    %544 = math.tanh %543 : vector<1x128xf32>
    %545 = vector.extract_strided_slice %544 {offsets = [0, 0], sizes = [1, 32], strides = [1, 1]} : vector<1x128xf32> to vector<1x32xf32>
    %cst_134 = arith.constant 1.000000e+00 : f32
    %546 = vector.broadcast %cst_134 : f32 to vector<1x32xf32>
    %547 = arith.addf %546, %545 : vector<1x32xf32>
    %cst_135 = arith.constant 5.000000e-01 : f32
    %548 = vector.broadcast %cst_135 : f32 to vector<1x32xf32>
    %549 = arith.mulf %548, %547 : vector<1x32xf32>
    %550 = vector.extract_strided_slice %544 {offsets = [0, 32], sizes = [1, 32], strides = [1, 1]} : vector<1x128xf32> to vector<1x32xf32>
    %cst_136 = arith.constant 1.000000e+00 : f32
    %551 = vector.broadcast %cst_136 : f32 to vector<1x32xf32>
    %552 = arith.addf %551, %550 : vector<1x32xf32>
    %cst_137 = arith.constant 5.000000e-01 : f32
    %553 = vector.broadcast %cst_137 : f32 to vector<1x32xf32>
    %554 = arith.mulf %553, %552 : vector<1x32xf32>
    %555 = vector.extract_strided_slice %544 {offsets = [0, 64], sizes = [1, 32], strides = [1, 1]} : vector<1x128xf32> to vector<1x32xf32>
    %556 = vector.extract_strided_slice %544 {offsets = [0, 96], sizes = [1, 32], strides = [1, 1]} : vector<1x128xf32> to vector<1x32xf32>
    %cst_138 = arith.constant 1.000000e+00 : f32
    %557 = vector.broadcast %cst_138 : f32 to vector<1x32xf32>
    %558 = arith.addf %557, %556 : vector<1x32xf32>
    %cst_139 = arith.constant 5.000000e-01 : f32
    %559 = vector.broadcast %cst_139 : f32 to vector<1x32xf32>
    %560 = arith.mulf %559, %558 : vector<1x32xf32>
    %561 = arith.mulf %554, %459 : vector<1x32xf32>
    %562 = arith.mulf %549, %555 : vector<1x32xf32>
    %563 = arith.addf %561, %562 : vector<1x32xf32>
    %564 = math.tanh %563 : vector<1x32xf32>
    %565 = arith.mulf %560, %564 : vector<1x32xf32>
    %cst_140 = arith.constant dense<0.000000e+00> : vector<1x256xf32>
    %566 = tpu.matmul %565, %2, %cst_140 {dimension_numbers = #tpu.dot_dimension_numbers<[1], [0], [0], [1], [0, 0, 1, 1], [], []>} : vector<1x32xf32>, vector<32x256xf32>, vector<1x256xf32> -> vector<1x256xf32>
    %567 = vector.extract_strided_slice %566 {offsets = [0, 0], sizes = [1, 128], strides = [1, 1]} : vector<1x256xf32> to vector<1x128xf32>
    %568 = arith.addf %567, %7 : vector<1x128xf32>
    %569 = vector.extract_strided_slice %566 {offsets = [0, 128], sizes = [1, 128], strides = [1, 1]} : vector<1x256xf32> to vector<1x128xf32>
    %570 = math.tanh %568 : vector<1x128xf32>
    %571 = vector.extract_strided_slice %568 {offsets = [0, 0], sizes = [1, 4], strides = [1, 1]} : vector<1x128xf32> to vector<1x4xf32>
    %572 = vector.extract_strided_slice %570 {offsets = [0, 8], sizes = [1, 1], strides = [1, 1]} : vector<1x128xf32> to vector<1x1xf32>
    %cst_141 = arith.constant 1.000000e+00 : f32
    %573 = vector.broadcast %cst_141 : f32 to vector<1x1xf32>
    %574 = arith.addf %573, %572 : vector<1x1xf32>
    %cst_142 = arith.constant 5.000000e-01 : f32
    %575 = vector.broadcast %cst_142 : f32 to vector<1x1xf32>
    %576 = arith.mulf %575, %574 : vector<1x1xf32>
    %577 = vector.extract_strided_slice %570 {offsets = [0, 16], sizes = [1, 4], strides = [1, 1]} : vector<1x128xf32> to vector<1x4xf32>
    %578 = vector.extract_strided_slice %570 {offsets = [0, 32], sizes = [1, 16], strides = [1, 1]} : vector<1x128xf32> to vector<1x16xf32>
    %579 = vector.extract_strided_slice %568 {offsets = [0, 48], sizes = [1, 1], strides = [1, 1]} : vector<1x128xf32> to vector<1x1xf32>
    %cst_143 = arith.constant 0.000000e+00 : f32
    %580 = vector.broadcast %cst_143 : f32 to vector<1x1xf32>
    %581 = arith.maximumf %579, %580 : vector<1x1xf32>
    %582 = math.absf %579 : vector<1x1xf32>
    %cst_144 = arith.constant 0.000000e+00 : f32
    %583 = vector.broadcast %cst_144 : f32 to vector<1x1xf32>
    %584 = arith.subf %583, %582 : vector<1x1xf32>
    %585 = math.exp %584 : vector<1x1xf32>
    %cst_145 = arith.constant 1.000000e+00 : f32
    %586 = vector.broadcast %cst_145 : f32 to vector<1x1xf32>
    %587 = arith.addf %586, %585 : vector<1x1xf32>
    %588 = math.log %587 : vector<1x1xf32>
    %589 = arith.addf %581, %588 : vector<1x1xf32>
    %590 = vector.extract_strided_slice %570 {offsets = [0, 56], sizes = [1, 1], strides = [1, 1]} : vector<1x128xf32> to vector<1x1xf32>
    %cst_146 = arith.constant 1.000000e+00 : f32
    %591 = vector.broadcast %cst_146 : f32 to vector<1x1xf32>
    %592 = arith.addf %591, %590 : vector<1x1xf32>
    %cst_147 = arith.constant 5.000000e-01 : f32
    %593 = vector.broadcast %cst_147 : f32 to vector<1x1xf32>
    %594 = arith.mulf %593, %592 : vector<1x1xf32>
    %cst_148 = arith.constant dense<0xFF800000> : vector<1xf32>
    %595 = vector.multi_reduction <maximumf>, %571, %cst_148 [1] : vector<1x4xf32> to vector<1xf32>
    %596 = vector.shape_cast %595 : vector<1xf32> to vector<1x1xf32>
    %597 = vector.broadcast %596 : vector<1x1xf32> to vector<1x4xf32>
    %598 = arith.subf %571, %597 : vector<1x4xf32>
    %599 = math.exp %598 : vector<1x4xf32>
    %cst_149 = arith.constant dense<0.000000e+00> : vector<1xf32>
    %600 = vector.multi_reduction <add>, %599, %cst_149 [1] : vector<1x4xf32> to vector<1xf32>
    %601 = vector.shape_cast %600 : vector<1xf32> to vector<1x1xf32>
    %602 = tpu.reciprocal %601 {approx = true} : vector<1x1xf32> -> vector<1x1xf32>
    %603 = vector.broadcast %602 : vector<1x1xf32> to vector<1x4xf32>
    %604 = arith.mulf %599, %603 : vector<1x4xf32>
    %605 = vector.broadcast %576 : vector<1x1xf32> to vector<1x4xf32>
    %606 = arith.mulf %604, %605 : vector<1x4xf32>
    %cst_150 = arith.constant 1.000000e+00 : f32
    %607 = vector.broadcast %cst_150 : f32 to vector<1x1xf32>
    %608 = arith.subf %607, %576 : vector<1x1xf32>
    %609 = vector.broadcast %608 : vector<1x1xf32> to vector<1x4xf32>
    %610 = arith.mulf %609, %507 : vector<1x4xf32>
    %611 = arith.addf %606, %610 : vector<1x4xf32>
    %612 = arith.mulf %611, %577 : vector<1x4xf32>
    %cst_151 = arith.constant dense<0.000000e+00> : vector<1xf32>
    %613 = vector.multi_reduction <add>, %612, %cst_151 [1] : vector<1x4xf32> to vector<1xf32>
    %614 = vector.shape_cast %613 : vector<1xf32> to vector<1x1xf32>
    %cst_152 = arith.constant dense<0.000000e+00> : vector<1x16xf32>
    %615 = tpu.matmul %578, %0, %cst_152 {dimension_numbers = #tpu.dot_dimension_numbers<[1], [0], [0], [1], [0, 0, 1, 1], [], []>} : vector<1x16xf32>, vector<16x16xf32>, vector<1x16xf32> -> vector<1x16xf32>
    %616 = vector.broadcast %589 : vector<1x1xf32> to vector<1x16xf32>
    %617 = arith.mulf %616, %615 : vector<1x16xf32>
    %cst_153 = arith.constant dense<0xFF800000> : vector<1xf32>
    %618 = vector.multi_reduction <maximumf>, %617, %cst_153 [1] : vector<1x16xf32> to vector<1xf32>
    %619 = vector.shape_cast %618 : vector<1xf32> to vector<1x1xf32>
    %620 = vector.broadcast %619 : vector<1x1xf32> to vector<1x16xf32>
    %621 = arith.subf %617, %620 : vector<1x16xf32>
    %622 = math.exp %621 : vector<1x16xf32>
    %cst_154 = arith.constant dense<0.000000e+00> : vector<1xf32>
    %623 = vector.multi_reduction <add>, %622, %cst_154 [1] : vector<1x16xf32> to vector<1xf32>
    %624 = vector.shape_cast %623 : vector<1xf32> to vector<1x1xf32>
    %625 = tpu.reciprocal %624 {approx = true} : vector<1x1xf32> -> vector<1x1xf32>
    %626 = vector.broadcast %625 : vector<1x1xf32> to vector<1x16xf32>
    %627 = arith.mulf %622, %626 : vector<1x16xf32>
    %628 = vector.broadcast %594 : vector<1x1xf32> to vector<1x16xf32>
    %629 = arith.mulf %628, %627 : vector<1x16xf32>
    %cst_155 = arith.constant 1.000000e+00 : f32
    %630 = vector.broadcast %cst_155 : f32 to vector<1x1xf32>
    %631 = arith.subf %630, %594 : vector<1x1xf32>
    %632 = vector.broadcast %631 : vector<1x1xf32> to vector<1x16xf32>
    %633 = arith.mulf %632, %530 : vector<1x16xf32>
    %634 = arith.addf %629, %633 : vector<1x16xf32>
    %cst_156 = arith.constant dense<0.000000e+00> : vector<1x128xf32>
    %635 = tpu.matmul %634, %1, %cst_156 {dimension_numbers = #tpu.dot_dimension_numbers<[1], [0], [0], [1], [0, 0, 1, 1], [], []>} : vector<1x16xf32>, vector<16x128xf32>, vector<1x128xf32> -> vector<1x128xf32>
    %636 = vector.broadcast %535 : f32 to vector<1x1xf32>
    %637 = arith.subf %636, %614 : vector<1x1xf32>
    %c6 = arith.constant 6 : index
    %638 = memref.load %arg0[%c6] : memref<8xf32, #tpu.memory_space<smem>>
    %c6_157 = arith.constant 6 : index
    %639 = memref.load %arg1[%c6_157] : memref<8xf32, #tpu.memory_space<smem>>
    %640 = arith.addf %569, %635 : vector<1x128xf32>
    %641 = vector.broadcast %638 : f32 to vector<1x128xf32>
    %642 = arith.mulf %641, %4 : vector<1x128xf32>
    %643 = arith.addf %640, %642 : vector<1x128xf32>
    %644 = vector.broadcast %637 : vector<1x1xf32> to vector<1x128xf32>
    %645 = arith.mulf %644, %5 : vector<1x128xf32>
    %646 = arith.addf %643, %645 : vector<1x128xf32>
    %647 = arith.addf %646, %6 : vector<1x128xf32>
    %648 = math.tanh %647 : vector<1x128xf32>
    %649 = vector.extract_strided_slice %648 {offsets = [0, 0], sizes = [1, 32], strides = [1, 1]} : vector<1x128xf32> to vector<1x32xf32>
    %cst_158 = arith.constant 1.000000e+00 : f32
    %650 = vector.broadcast %cst_158 : f32 to vector<1x32xf32>
    %651 = arith.addf %650, %649 : vector<1x32xf32>
    %cst_159 = arith.constant 5.000000e-01 : f32
    %652 = vector.broadcast %cst_159 : f32 to vector<1x32xf32>
    %653 = arith.mulf %652, %651 : vector<1x32xf32>
    %654 = vector.extract_strided_slice %648 {offsets = [0, 32], sizes = [1, 32], strides = [1, 1]} : vector<1x128xf32> to vector<1x32xf32>
    %cst_160 = arith.constant 1.000000e+00 : f32
    %655 = vector.broadcast %cst_160 : f32 to vector<1x32xf32>
    %656 = arith.addf %655, %654 : vector<1x32xf32>
    %cst_161 = arith.constant 5.000000e-01 : f32
    %657 = vector.broadcast %cst_161 : f32 to vector<1x32xf32>
    %658 = arith.mulf %657, %656 : vector<1x32xf32>
    %659 = vector.extract_strided_slice %648 {offsets = [0, 64], sizes = [1, 32], strides = [1, 1]} : vector<1x128xf32> to vector<1x32xf32>
    %660 = vector.extract_strided_slice %648 {offsets = [0, 96], sizes = [1, 32], strides = [1, 1]} : vector<1x128xf32> to vector<1x32xf32>
    %cst_162 = arith.constant 1.000000e+00 : f32
    %661 = vector.broadcast %cst_162 : f32 to vector<1x32xf32>
    %662 = arith.addf %661, %660 : vector<1x32xf32>
    %cst_163 = arith.constant 5.000000e-01 : f32
    %663 = vector.broadcast %cst_163 : f32 to vector<1x32xf32>
    %664 = arith.mulf %663, %662 : vector<1x32xf32>
    %665 = arith.mulf %658, %563 : vector<1x32xf32>
    %666 = arith.mulf %653, %659 : vector<1x32xf32>
    %667 = arith.addf %665, %666 : vector<1x32xf32>
    %668 = math.tanh %667 : vector<1x32xf32>
    %669 = arith.mulf %664, %668 : vector<1x32xf32>
    %cst_164 = arith.constant dense<0.000000e+00> : vector<1x256xf32>
    %670 = tpu.matmul %669, %2, %cst_164 {dimension_numbers = #tpu.dot_dimension_numbers<[1], [0], [0], [1], [0, 0, 1, 1], [], []>} : vector<1x32xf32>, vector<32x256xf32>, vector<1x256xf32> -> vector<1x256xf32>
    %671 = vector.extract_strided_slice %670 {offsets = [0, 0], sizes = [1, 128], strides = [1, 1]} : vector<1x256xf32> to vector<1x128xf32>
    %672 = arith.addf %671, %7 : vector<1x128xf32>
    %673 = vector.extract_strided_slice %670 {offsets = [0, 128], sizes = [1, 128], strides = [1, 1]} : vector<1x256xf32> to vector<1x128xf32>
    %674 = math.tanh %672 : vector<1x128xf32>
    %675 = vector.extract_strided_slice %672 {offsets = [0, 0], sizes = [1, 4], strides = [1, 1]} : vector<1x128xf32> to vector<1x4xf32>
    %676 = vector.extract_strided_slice %674 {offsets = [0, 8], sizes = [1, 1], strides = [1, 1]} : vector<1x128xf32> to vector<1x1xf32>
    %cst_165 = arith.constant 1.000000e+00 : f32
    %677 = vector.broadcast %cst_165 : f32 to vector<1x1xf32>
    %678 = arith.addf %677, %676 : vector<1x1xf32>
    %cst_166 = arith.constant 5.000000e-01 : f32
    %679 = vector.broadcast %cst_166 : f32 to vector<1x1xf32>
    %680 = arith.mulf %679, %678 : vector<1x1xf32>
    %681 = vector.extract_strided_slice %674 {offsets = [0, 16], sizes = [1, 4], strides = [1, 1]} : vector<1x128xf32> to vector<1x4xf32>
    %682 = vector.extract_strided_slice %674 {offsets = [0, 32], sizes = [1, 16], strides = [1, 1]} : vector<1x128xf32> to vector<1x16xf32>
    %683 = vector.extract_strided_slice %672 {offsets = [0, 48], sizes = [1, 1], strides = [1, 1]} : vector<1x128xf32> to vector<1x1xf32>
    %cst_167 = arith.constant 0.000000e+00 : f32
    %684 = vector.broadcast %cst_167 : f32 to vector<1x1xf32>
    %685 = arith.maximumf %683, %684 : vector<1x1xf32>
    %686 = math.absf %683 : vector<1x1xf32>
    %cst_168 = arith.constant 0.000000e+00 : f32
    %687 = vector.broadcast %cst_168 : f32 to vector<1x1xf32>
    %688 = arith.subf %687, %686 : vector<1x1xf32>
    %689 = math.exp %688 : vector<1x1xf32>
    %cst_169 = arith.constant 1.000000e+00 : f32
    %690 = vector.broadcast %cst_169 : f32 to vector<1x1xf32>
    %691 = arith.addf %690, %689 : vector<1x1xf32>
    %692 = math.log %691 : vector<1x1xf32>
    %693 = arith.addf %685, %692 : vector<1x1xf32>
    %694 = vector.extract_strided_slice %674 {offsets = [0, 56], sizes = [1, 1], strides = [1, 1]} : vector<1x128xf32> to vector<1x1xf32>
    %cst_170 = arith.constant 1.000000e+00 : f32
    %695 = vector.broadcast %cst_170 : f32 to vector<1x1xf32>
    %696 = arith.addf %695, %694 : vector<1x1xf32>
    %cst_171 = arith.constant 5.000000e-01 : f32
    %697 = vector.broadcast %cst_171 : f32 to vector<1x1xf32>
    %698 = arith.mulf %697, %696 : vector<1x1xf32>
    %cst_172 = arith.constant dense<0xFF800000> : vector<1xf32>
    %699 = vector.multi_reduction <maximumf>, %675, %cst_172 [1] : vector<1x4xf32> to vector<1xf32>
    %700 = vector.shape_cast %699 : vector<1xf32> to vector<1x1xf32>
    %701 = vector.broadcast %700 : vector<1x1xf32> to vector<1x4xf32>
    %702 = arith.subf %675, %701 : vector<1x4xf32>
    %703 = math.exp %702 : vector<1x4xf32>
    %cst_173 = arith.constant dense<0.000000e+00> : vector<1xf32>
    %704 = vector.multi_reduction <add>, %703, %cst_173 [1] : vector<1x4xf32> to vector<1xf32>
    %705 = vector.shape_cast %704 : vector<1xf32> to vector<1x1xf32>
    %706 = tpu.reciprocal %705 {approx = true} : vector<1x1xf32> -> vector<1x1xf32>
    %707 = vector.broadcast %706 : vector<1x1xf32> to vector<1x4xf32>
    %708 = arith.mulf %703, %707 : vector<1x4xf32>
    %709 = vector.broadcast %680 : vector<1x1xf32> to vector<1x4xf32>
    %710 = arith.mulf %708, %709 : vector<1x4xf32>
    %cst_174 = arith.constant 1.000000e+00 : f32
    %711 = vector.broadcast %cst_174 : f32 to vector<1x1xf32>
    %712 = arith.subf %711, %680 : vector<1x1xf32>
    %713 = vector.broadcast %712 : vector<1x1xf32> to vector<1x4xf32>
    %714 = arith.mulf %713, %611 : vector<1x4xf32>
    %715 = arith.addf %710, %714 : vector<1x4xf32>
    %716 = arith.mulf %715, %681 : vector<1x4xf32>
    %cst_175 = arith.constant dense<0.000000e+00> : vector<1xf32>
    %717 = vector.multi_reduction <add>, %716, %cst_175 [1] : vector<1x4xf32> to vector<1xf32>
    %718 = vector.shape_cast %717 : vector<1xf32> to vector<1x1xf32>
    %cst_176 = arith.constant dense<0.000000e+00> : vector<1x16xf32>
    %719 = tpu.matmul %682, %0, %cst_176 {dimension_numbers = #tpu.dot_dimension_numbers<[1], [0], [0], [1], [0, 0, 1, 1], [], []>} : vector<1x16xf32>, vector<16x16xf32>, vector<1x16xf32> -> vector<1x16xf32>
    %720 = vector.broadcast %693 : vector<1x1xf32> to vector<1x16xf32>
    %721 = arith.mulf %720, %719 : vector<1x16xf32>
    %cst_177 = arith.constant dense<0xFF800000> : vector<1xf32>
    %722 = vector.multi_reduction <maximumf>, %721, %cst_177 [1] : vector<1x16xf32> to vector<1xf32>
    %723 = vector.shape_cast %722 : vector<1xf32> to vector<1x1xf32>
    %724 = vector.broadcast %723 : vector<1x1xf32> to vector<1x16xf32>
    %725 = arith.subf %721, %724 : vector<1x16xf32>
    %726 = math.exp %725 : vector<1x16xf32>
    %cst_178 = arith.constant dense<0.000000e+00> : vector<1xf32>
    %727 = vector.multi_reduction <add>, %726, %cst_178 [1] : vector<1x16xf32> to vector<1xf32>
    %728 = vector.shape_cast %727 : vector<1xf32> to vector<1x1xf32>
    %729 = tpu.reciprocal %728 {approx = true} : vector<1x1xf32> -> vector<1x1xf32>
    %730 = vector.broadcast %729 : vector<1x1xf32> to vector<1x16xf32>
    %731 = arith.mulf %726, %730 : vector<1x16xf32>
    %732 = vector.broadcast %698 : vector<1x1xf32> to vector<1x16xf32>
    %733 = arith.mulf %732, %731 : vector<1x16xf32>
    %cst_179 = arith.constant 1.000000e+00 : f32
    %734 = vector.broadcast %cst_179 : f32 to vector<1x1xf32>
    %735 = arith.subf %734, %698 : vector<1x1xf32>
    %736 = vector.broadcast %735 : vector<1x1xf32> to vector<1x16xf32>
    %737 = arith.mulf %736, %634 : vector<1x16xf32>
    %738 = arith.addf %733, %737 : vector<1x16xf32>
    %cst_180 = arith.constant dense<0.000000e+00> : vector<1x128xf32>
    %739 = tpu.matmul %738, %1, %cst_180 {dimension_numbers = #tpu.dot_dimension_numbers<[1], [0], [0], [1], [0, 0, 1, 1], [], []>} : vector<1x16xf32>, vector<16x128xf32>, vector<1x128xf32> -> vector<1x128xf32>
    %740 = vector.broadcast %639 : f32 to vector<1x1xf32>
    %741 = arith.subf %740, %718 : vector<1x1xf32>
    %c7 = arith.constant 7 : index
    %742 = memref.load %arg0[%c7] : memref<8xf32, #tpu.memory_space<smem>>
    %743 = arith.addf %673, %739 : vector<1x128xf32>
    %744 = vector.broadcast %742 : f32 to vector<1x128xf32>
    %745 = arith.mulf %744, %4 : vector<1x128xf32>
    %746 = arith.addf %743, %745 : vector<1x128xf32>
    %747 = vector.broadcast %741 : vector<1x1xf32> to vector<1x128xf32>
    %748 = arith.mulf %747, %5 : vector<1x128xf32>
    %749 = arith.addf %746, %748 : vector<1x128xf32>
    %750 = arith.addf %749, %6 : vector<1x128xf32>
    %751 = math.tanh %750 : vector<1x128xf32>
    %752 = vector.extract_strided_slice %751 {offsets = [0, 0], sizes = [1, 32], strides = [1, 1]} : vector<1x128xf32> to vector<1x32xf32>
    %cst_181 = arith.constant 1.000000e+00 : f32
    %753 = vector.broadcast %cst_181 : f32 to vector<1x32xf32>
    %754 = arith.addf %753, %752 : vector<1x32xf32>
    %cst_182 = arith.constant 5.000000e-01 : f32
    %755 = vector.broadcast %cst_182 : f32 to vector<1x32xf32>
    %756 = arith.mulf %755, %754 : vector<1x32xf32>
    %757 = vector.extract_strided_slice %751 {offsets = [0, 32], sizes = [1, 32], strides = [1, 1]} : vector<1x128xf32> to vector<1x32xf32>
    %cst_183 = arith.constant 1.000000e+00 : f32
    %758 = vector.broadcast %cst_183 : f32 to vector<1x32xf32>
    %759 = arith.addf %758, %757 : vector<1x32xf32>
    %cst_184 = arith.constant 5.000000e-01 : f32
    %760 = vector.broadcast %cst_184 : f32 to vector<1x32xf32>
    %761 = arith.mulf %760, %759 : vector<1x32xf32>
    %762 = vector.extract_strided_slice %751 {offsets = [0, 64], sizes = [1, 32], strides = [1, 1]} : vector<1x128xf32> to vector<1x32xf32>
    %763 = vector.extract_strided_slice %751 {offsets = [0, 96], sizes = [1, 32], strides = [1, 1]} : vector<1x128xf32> to vector<1x32xf32>
    %cst_185 = arith.constant 1.000000e+00 : f32
    %764 = vector.broadcast %cst_185 : f32 to vector<1x32xf32>
    %765 = arith.addf %764, %763 : vector<1x32xf32>
    %cst_186 = arith.constant 5.000000e-01 : f32
    %766 = vector.broadcast %cst_186 : f32 to vector<1x32xf32>
    %767 = arith.mulf %766, %765 : vector<1x32xf32>
    %768 = arith.mulf %761, %667 : vector<1x32xf32>
    %769 = arith.mulf %756, %762 : vector<1x32xf32>
    %770 = arith.addf %768, %769 : vector<1x32xf32>
    %771 = math.tanh %770 : vector<1x32xf32>
    %772 = arith.mulf %767, %771 : vector<1x32xf32>
    %cst_187 = arith.constant dense<0.000000e+00> : vector<1x256xf32>
    %773 = tpu.matmul %772, %2, %cst_187 {dimension_numbers = #tpu.dot_dimension_numbers<[1], [0], [0], [1], [0, 0, 1, 1], [], []>} : vector<1x32xf32>, vector<32x256xf32>, vector<1x256xf32> -> vector<1x256xf32>
    %774 = vector.extract_strided_slice %773 {offsets = [0, 0], sizes = [1, 128], strides = [1, 1]} : vector<1x256xf32> to vector<1x128xf32>
    %775 = arith.addf %774, %7 : vector<1x128xf32>
    %776 = math.tanh %775 : vector<1x128xf32>
    %777 = vector.extract_strided_slice %775 {offsets = [0, 0], sizes = [1, 4], strides = [1, 1]} : vector<1x128xf32> to vector<1x4xf32>
    %778 = vector.extract_strided_slice %776 {offsets = [0, 8], sizes = [1, 1], strides = [1, 1]} : vector<1x128xf32> to vector<1x1xf32>
    %cst_188 = arith.constant 1.000000e+00 : f32
    %779 = vector.broadcast %cst_188 : f32 to vector<1x1xf32>
    %780 = arith.addf %779, %778 : vector<1x1xf32>
    %cst_189 = arith.constant 5.000000e-01 : f32
    %781 = vector.broadcast %cst_189 : f32 to vector<1x1xf32>
    %782 = arith.mulf %781, %780 : vector<1x1xf32>
    %783 = vector.extract_strided_slice %776 {offsets = [0, 16], sizes = [1, 4], strides = [1, 1]} : vector<1x128xf32> to vector<1x4xf32>
    %cst_190 = arith.constant dense<0xFF800000> : vector<1xf32>
    %784 = vector.multi_reduction <maximumf>, %777, %cst_190 [1] : vector<1x4xf32> to vector<1xf32>
    %785 = vector.shape_cast %784 : vector<1xf32> to vector<1x1xf32>
    %786 = vector.broadcast %785 : vector<1x1xf32> to vector<1x4xf32>
    %787 = arith.subf %777, %786 : vector<1x4xf32>
    %788 = math.exp %787 : vector<1x4xf32>
    %cst_191 = arith.constant dense<0.000000e+00> : vector<1xf32>
    %789 = vector.multi_reduction <add>, %788, %cst_191 [1] : vector<1x4xf32> to vector<1xf32>
    %790 = vector.shape_cast %789 : vector<1xf32> to vector<1x1xf32>
    %791 = tpu.reciprocal %790 {approx = true} : vector<1x1xf32> -> vector<1x1xf32>
    %792 = vector.broadcast %791 : vector<1x1xf32> to vector<1x4xf32>
    %793 = arith.mulf %788, %792 : vector<1x4xf32>
    %794 = vector.broadcast %782 : vector<1x1xf32> to vector<1x4xf32>
    %795 = arith.mulf %793, %794 : vector<1x4xf32>
    %cst_192 = arith.constant 1.000000e+00 : f32
    %796 = vector.broadcast %cst_192 : f32 to vector<1x1xf32>
    %797 = arith.subf %796, %782 : vector<1x1xf32>
    %798 = vector.broadcast %797 : vector<1x1xf32> to vector<1x4xf32>
    %799 = arith.mulf %798, %715 : vector<1x4xf32>
    %800 = arith.addf %795, %799 : vector<1x4xf32>
    %801 = arith.mulf %800, %783 : vector<1x4xf32>
    %cst_193 = arith.constant dense<0.000000e+00> : vector<1xf32>
    %802 = vector.multi_reduction <add>, %801, %cst_193 [1] : vector<1x4xf32> to vector<1xf32>
    %803 = vector.shape_cast %802 : vector<1xf32> to vector<1x1xf32>
    %804 = tpu.concatenate %94, %198, %302, %406, %510, %614, %718, %803 in 0 : vector<1x1xf32>, vector<1x1xf32>, vector<1x1xf32>, vector<1x1xf32>, vector<1x1xf32>, vector<1x1xf32>, vector<1x1xf32>, vector<1x1xf32> -> vector<8x1xf32>
    %c0_194 = arith.constant 0 : index
    %c0_195 = arith.constant 0 : index
    %805 = vector.load %arg6[%c0_194, %c0_195] : memref<8x1xf32, #tpu.memory_space<vmem>>, vector<8x1xf32>
    tpu.vector_store %arg6[%c0_194, %c0_195], %804 {strides = array<i32>} : memref<8x1xf32, #tpu.memory_space<vmem>>, vector<8x1xf32>,
    %806 = tpu.concatenate %91, %195, %299, %403, %507, %611, %715, %800 in 0 : vector<1x4xf32>, vector<1x4xf32>, vector<1x4xf32>, vector<1x4xf32>, vector<1x4xf32>, vector<1x4xf32>, vector<1x4xf32>, vector<1x4xf32> -> vector<8x4xf32>
    %c0_196 = arith.constant 0 : index
    %c0_197 = arith.constant 0 : index
    %807 = vector.load %arg7[%c0_196, %c0_197] : memref<8x4xf32, #tpu.memory_space<vmem>>, vector<8x4xf32>
    tpu.vector_store %arg7[%c0_196, %c0_197], %806 {strides = array<i32>} : memref<8x4xf32, #tpu.memory_space<vmem>>, vector<8x4xf32>,
    return
  }
}

</mosaic_0001>

<bundles_post_ra>
// kernel: tpu_custom_call.1
= control target key start
LH: loop header
LB: loop body
LE: loop exit
PB: predicated region body
PF: predicated region fallthrough
CT: control target
= control target key end

     0   :  { %13 = vsyncpa [#allocation4], 0  ;;  %s2523_s0 = inlined_call_operand.hbm [shape: f32[8], index: 0, kind: input, shape index: {}]   ;;  %s2524_s1 = inlined_call_operand.hbm [shape: f32[8], index: 1, kind: input, shape index: {}]   ;;  %s2525_s2 = inlined_call_operand.hbm [shape: f32[16,16], index: 2, kind: input, shape index: {}]   ;;  %s2526_s3 = inlined_call_operand.hbm [shape: f32[16,128], index: 3, kind: input, shape index: {}]   ;;  %s2527_s4 = inlined_call_operand.hbm [shape: f32[32,256], index: 4, kind: input, shape index: {}]   ;;  %s2528_s5 = inlined_call_operand.vmem [shape: f32[4,128], index: 5, kind: input, shape index: {}]   ;;  %s2529_s6 = inlined_call_operand.vmem [shape: f32[8,1], index: 6, kind: output, shape index: {0}]   ;;  %s2530_s7 = inlined_call_operand.vmem [shape: f32[8,4], index: 7, kind: output, shape index: {1}]  }
   0x1   :  { %14 = vsyncpa [#allocation6], 0 }
   0x2   :  { %15 = vsyncpa [#allocation3], 0 }
   0x3   :  { %16 = vsyncpa [#allocation9], 0  ;;  %s52_s26 = sshll.u32 %s2526_s3, 4  ;;  %s2009_s27 = smov [#allocation8]   ;;  %s53_s26 = int_to_ptr.hbm [resolvable:$true] %s52_s26 }
   0x4   :  { %s54_s28 = sshll.u32 %s2009_s27, 4  ;;  %s22_s8 = sshll.u32 %s2523_s0, 4  ;;  %s55_s28 = int_to_ptr.vmem [resolvable:$true] %s54_s28  ;;  %s23_s8 = int_to_ptr.hbm [resolvable:$true] %s22_s8 }
   0x5   :  { %s2010_s9 = smov 128   ;;  %s2011_s10 = smov 8  }
   0x6   :  { %60 = dma.hbm_to_vmem [thread:$0]  %s53_s26, 256, %s55_s28, [#allocation9], %s2010_s9, %s2010_s9, %s2011_s10  }
   0x7   :  { %s2012_s11 = smov [#allocation2]   ;;  %s31_s14 = sshll.u32 %s2524_s1, 4  ;;  %s32_s14 = int_to_ptr.hbm [resolvable:$true] %s31_s14 }
   0x8   :  { %25 = dma.hbm_to_smem %s23_s8, 16, %s2012_s11, [#allocation4]  }
   0x9   :  { %s39_s16 = sshll.u32 %s2525_s2, 4  ;;  %s2013_s17 = smov [#allocation5]   ;;  %s40_s16 = int_to_ptr.hbm [resolvable:$true] %s39_s16 }
   0xa   :  { %34 = dma.hbm_to_smem %s32_s14, 16, %s2013_s17, [#allocation6]  }
   0xb   :  { %s2014_s18 = smov [#allocation7]   ;;  %s65_s21 = sshll.u32 %s2527_s4, 4  ;;  %s66_s21 = int_to_ptr.hbm [resolvable:$true] %s65_s21 }
   0xc   :  { %s41_s0 = sshll.u32 %s2014_s18, 4  ;;  %s2015_s22 = smov [#allocation10]   ;;  %s42_s0 = int_to_ptr.vmem [resolvable:$true] %s41_s0 }
   0xd   :  { %47 = dma.hbm_to_vmem [thread:$0]  %s40_s16, 256, %s42_s0, [#allocation3], %s2010_s9, %s2010_s9, %s2011_s10  }
   0xe   :  { %s67_s23 = sshll.u32 %s2015_s22, 4  ;;  %s2016_s1 = smov 256   ;;  %s68_s23 = int_to_ptr.vmem [resolvable:$true] %s67_s23 }
   0xf   :  { %s2017_s24 = smov 16  }
  0x10   :  { %73 = dma.hbm_to_vmem [thread:$0]  %s66_s21, 1024, %s68_s23, [#allocation9], %s2016_s1, %s2016_s1, %s2017_s24  }
  0x11   :  { %2001 = dma.done.wait [#allocation4], 16  }
  0x12   :  { %2002 = vsyncadd [#allocation4], 4294967280 }
  0x13   :  { %2003 = dma.done.wait [#allocation6], 16  }
  0x14   :  { %2004 = vsyncadd [#allocation6], 4294967280 }
  0x15   :  { %2005 = dma.done.wait [#allocation3], 256  }
  0x16   :  { %2006 = vsyncadd [#allocation3], 4294967040 }
  0x17   :  { %2007 = dma.done.wait [#allocation9], 1280  }
  0x18   :  { %2008 = vsyncadd [#allocation9], 4294966016 }
  0x19   :  { %96 = sfence }
  0x1a   :  { %v2083_v0 = vld [vmem:[%s2528_s5] sm:$0xf]  ;;  %s110_s25 = sld [smem:[#allocation2]]  ;;  %s2018_s26 = smov 64   ;;  %v2097_v17 = vld [vmem:[#allocation10 + $0x30] sm:$0xff]  ;;  %v2099_v18 = vld [vmem:[#allocation10 + $0x38] sm:$0xff] }
  0x1b   :  { %v115_v1 = vmul.f32 0.0, %v2083_v0  ;;  %v2088_v5 = vrot.slane %v2083_v0, 2  ;;  %s2019_s27 = smov 32   ;;  %v2101_v19 = vld [vmem:[#allocation10 + $0x20] sm:$0xff]  ;;  %162 = vmatpush.msra.mxu0 %v2097_v17  ;;  %182 = vmatpush.msra.mxu1 %v2099_v18  ;;  %v2105_v20 = vld [vmem:[#allocation10 + $0x28] sm:$0xff]  ;;  %v2107_v21 = vld [vmem:[#allocation10 + $0x10] sm:$0xff] }
  0x1c   :  { %v2109_v22 = vld [vmem:[#allocation10 + $0x18] sm:$0xff]  ;;  %v2116_v25 = vld [vmem:[#allocation10] sm:$0xff]  ;;  %v2118_v26 = vld [vmem:[#allocation10 + $0x8] sm:$0xff]  ;;  %vm147_vm0 = vcmask 261120   ;;  %v2020_v28 = vmov 48   ;;  %v2126_v29 = vrot.slane %v2083_v0, 3 }
  0x1d   :  { %v117_v2 = vrot.slane %v115_v1, 1  ;;  %163 = vmatpush.msra.mxu0 %v2101_v19  ;;  %183 = vmatpush.msra.mxu1 %v2105_v20  ;;  %s2021_s28 = smov 96   ;;  %v2022_v44 = vmov 56   ;;  %v2132_v46 = vld [vmem:[#allocation7 + $0x8] sm:$0xff]  ;;  %v2136_v47 = vld [vmem:[#allocation7] sm:$0xff]  ;;  %vm205_vm1 = vcmask 24576  }
  0x1e   :  { %1729 = vset.pattern.permute.xlu2 %v2020_v28  ;;  %258 = vmatpush.msra.mxu2 %v2132_v46  ;;  %vm241_vm2 = vcmask 130048   ;;  %s2023_s29 = smov 112   ;;  %v2024_v52 = vmov 8   ;;  %vm270_vm3 = vcmask 122880   ;;  %s1675_s30 = sld [smem:[#allocation2 + $0x1]]  ;;  %vm1613_vm4 = vcmask 1040384  }
  0x1f   :  { %164 = vmatpush.msra.mxu0 %v2107_v21  ;;  %184 = vmatpush.msra.mxu1 %v2109_v22  ;;  %s111_s8 = sld [smem:[#allocation5]]  ;;  %vm1615_vm5 = vcmask 1041408   ;;  %vm1617_vm6 = vcmask 1042432   ;;  %vm1619_vm7 = vcmask 1043456   ;;  %vm1621_vm8 = vcmask 1044480  }
  0x20   :  { %v112_v3 = vstv %s110_s25  ;;  %259 = vmatpush.msra.mxu2 %v2136_v47  ;;  %1732 = vset.pattern.permute.xlu0 %v2024_v52  ;;  %s1681_s9 = sld [smem:[#allocation2 + $0x2]]  ;;  %vm1623_vm9 = vcmask 1045504   ;;  %vm1625_vm10 = vcmask 1046528   ;;  %vm1657_vm11 = vcmask 31744  }
  0x21   :  { %v113_v4 = vmul.f32 %v112_v3, %v2083_v0  ;;  %165 = vmatpush.msra.mxu0 %v2116_v25  ;;  %185 = vmatpush.msra.mxu1 %v2118_v26  ;;  %s1676_s10 = sld [smem:[#allocation5 + $0x1]]  ;;  %vm1627_vm12 = vcmask 7168  }
  0x22   :  { %366 = vmatpush.msrb.mxu2 %v2097_v17  ;;  %1731 = vset.pattern.permute.xlu1 %v2024_v52  ;;  %s1687_s11 = sld [smem:[#allocation2 + $0x3]] }
  0x23   :  { %v119_v6 = vadd.f32 %v117_v2, %v113_v4  ;;  %458 = vmatpush.msrb.mxu0 %v2132_v46  ;;  %v2159_v4 = vld [vmem:[#allocation8 + $0x8] sm:$0xff]  ;;  %s1682_s12 = sld [smem:[#allocation5 + $0x2]] }
  0x24   :  { %367 = vmatpush.msrb.mxu2 %v2101_v19  ;;  %310 = vmatpush.msra.mxu3 %v2159_v4  ;;  %s1693_s13 = sld [smem:[#allocation2 + $0x4]] }
  0x25   :  { %v123_v7 = vadd.f32 %v2088_v5, %v119_v6  ;;  %459 = vmatpush.msrb.mxu0 %v2136_v47  ;;  %v2161_v6 = vld [vmem:[#allocation8] sm:$0xff]  ;;  %509 = vmatpush.msrb.mxu1 %v2159_v4  ;;  %s1688_s14 = sld [smem:[#allocation5 + $0x3]] }
  0x26   :  { %368 = vmatpush.msrb.mxu2 %v2107_v21  ;;  %311 = vmatpush.msra.mxu3 %v2161_v6  ;;  %s1694_s16 = sld [smem:[#allocation5 + $0x4]] }
  0x27   :  { %1758 = vtanh.f32 %v123_v7  ;;  %510 = vmatpush.msrb.mxu1 %v2161_v6  ;;  %s1705_s17 = sld [smem:[#allocation2 + $0x6]] }
  0x28   :  { %369 = vmatpush.msrb.mxu2 %v2116_v25  ;;  %386 = vmatpush.msrb.mxu3 %v2099_v18  ;;  %s1700_s18 = sld [smem:[#allocation5 + $0x5]] }
  0x29   :  { %s1711_s0 = sld [smem:[#allocation2 + $0x7]] }
  0x2a   :  { %387 = vmatpush.msrb.mxu3 %v2105_v20  ;;  %s1706_s19 = sld [smem:[#allocation5 + $0x6]] }
  0x2c   :  { %388 = vmatpush.msrb.mxu3 %v2109_v22 }
  0x2d   :  { %v1759_v8 = vpop.eup %1758 }
  0x2e   :  { %129 = vrot.lane.b32.xlu0 %v1759_v8, %s2018_s26  ;;  %v125_v9 = vadd.f32 1.0, %v1759_v8  ;;  %389 = vmatpush.msrb.mxu3 %v2118_v26 }
  0x30   :  { %v126_v10 = vmul.f32 0.5, %v125_v9 }
  0x32   :  { %v127_v13 = vmul.f32 0.0, %v126_v10 }
  0xa0   :  { %v130_v11 = vpop.permute.xlu0 %129 }
  0xa1   :  { %v132_v12 = vmul.f32 %v130_v11, %v126_v10 }
  0xa3   :  { %134 = vrot.lane.b32.xlu0 %v132_v12, %s2019_s27 }
 0x115   :  { %v135_v14 = vpop.permute.xlu0 %134 }
 0x116   :  { %v2093_v15 = vadd.f32 %v135_v14, %v127_v13 }
 0x118   :  { %1760 = vtanh.f32 %v2093_v15 }
 0x11e   :  { %v1761_v16 = vpop.eup %1760 }
 0x11f   :  { %140 = vrot.lane.b32.xlu1 %v1761_v16, %s2018_s26 }
 0x191   :  { %v141_v23 = vpop.permute.xlu1 %140 }
 0x192   :  { %v143_v24 = vmul.f32 %v141_v23, %v126_v10 }
 0x194   :  { %145 = vrot.lane.b32.xlu1 %v143_v24, %s2019_s27 }
 0x206   :  { %v146_v27 = vpop.permute.xlu1 %145 }
 0x207   :  { %1671 = vmatmul.msk.f32.vlgmr.msra.gmra.mxu0 %vm147_vm0, %v146_v27  ;;  %1672 = vmatmul.msk.f32.vlgmr.msra.gmra.mxu1 %vm147_vm0, %v146_v27 }
 0x208   :  { %655 = vmatpush.msra.mxu0 %v2132_v46  ;;  %706 = vmatpush.msra.mxu1 %v2159_v4 }
 0x20a   :  { %656 = vmatpush.msra.mxu0 %v2136_v47  ;;  %707 = vmatpush.msra.mxu1 %v2161_v6 }
 0x284   :  { %v167_v30 = vpop.f32.mrf.mxu0 }
 0x285   :  { %v192_v31 = vadd.f32 %v2126_v29, %v167_v30 }
 0x287   :  { %1762 = vtanh.f32 %v192_v31  ;;  %v197_v32 = vand.u32 2147483647, %v192_v31  ;;  %v196_v39 = vmax.f32 %v192_v31, 0.0  ;;  %v206_v48 = vsel %vm205_vm1, %v192_v31, -inf }
 0x289   :  { %v198_v33 = vsub.f32 0.0, %v197_v32 }
 0x28b   :  { %v199_v34 = vmul.f32 1.442695, %v198_v33 }
 0x28d   :  { %v1763_v35 = vpop.eup %1762  ;;  %1764 = vpow2.f32 %v199_v34 }
 0x28e   :  { %239 = vrot.lane.b32.xlu2 %v1763_v35, %s2021_s28  ;;  %v194_v42 = vadd.f32 1.0, %v1763_v35 }
 0x290   :  { %v195_v43 = vmul.f32 0.5, %v194_v42 }
 0x292   :  { %v223_v45 = vsub.f32 1.0, %v195_v43 }
 0x293   :  { %v1765_v36 = vpop.eup %1764 }
 0x294   :  { %v201_v37 = vadd.f32 1.0, %v1765_v36  ;;  %v187_v36 = vpop.f32.mrf.mxu1 }
 0x296   :  { %1766 = vlog2.f32 %v201_v37 }
 0x29c   :  { %v1767_v38 = vpop.eup %1766 }
 0x29d   :  { %v203_v40 = vmul.f32 0.6931472, %v1767_v38  ;;  %v316_v38 = vstv %s111_s8 }
 0x29f   :  { %v204_v41 = vadd.f32 %v203_v40, %v196_v39 }
 0x2a1   :  { %266 = vperm.xlu2 %1729, %v204_v41   ;;  %v2187_v41 = vrot.slane %v2083_v0, 1 }
 0x2a9   :  { %1730 = vset.pattern.permute.xlu2 %v2022_v44 }
 0x2aa   :  { %283 = vperm.xlu2 %1730, %v195_v43  }
 0x2b2   :  { %288 = vperm.xlu2 %1730, %v223_v45  }
 0x2ba   :  { %1733 = vset.pattern.permute.xlu2 %v2020_v28 }
 0x2db   :  { %207 = vmax.xlane.f32.xlu2 %v206_v48 }
 0x2e8   :  { %v240_v49 = vpop.permute.xlu2 %239 }
 0x2e9   :  { %1673 = vmatmul.msk.f32.vlgmr.msra.gmra.mxu2 %vm241_vm2, %v240_v49 }
 0x2ea   :  { %563 = vmatpush.msra.mxu2 %v2097_v17 }
 0x2ec   :  { %564 = vmatpush.msra.mxu2 %v2101_v19 }
 0x2ee   :  { %565 = vmatpush.msra.mxu2 %v2107_v21 }
 0x2f0   :  { %566 = vmatpush.msra.mxu2 %v2116_v25 }
 0x2f3   :  { %232 = vrot.lane.b32.xlu2 %v1763_v35, %s2023_s29  ;;  %v321_v35 = vstv %s1675_s30 }
 0x2f4   :  { %v322_v40 = vmul.f32 %v321_v35, %v2083_v0 }
 0x2fb   :  { %v267_v50 = vpop.permute.xlu2 %266 }
 0x304   :  { %v284_v51 = vpop.permute.xlu2 %283 }
 0x30c   :  { %v289_v53 = vpop.permute.xlu2 %288 }
 0x30d   :  { %v291_v10 = vmul.f32 0.0, %v289_v53 }
 0x34e   :  { %v208_v54 = vpop.xlane.xlu2 %207 }
 0x34f   :  { %v209_v55 = vsub.f32 %v192_v31, %v208_v54 }
 0x351   :  { %v210_v56 = vmul.f32 1.442695, %v209_v55 }
 0x353   :  { %1768 = vpow2.f32 %v210_v56 }
 0x356   :  { %v233_v32 = vpop.permute.xlu2 %232 }
 0x359   :  { %v1769_v60 = vpop.eup %1768 }
 0x35a   :  { %v212_v61 = vsel %vm205_vm1, %v1769_v60, 0.0 }
 0x36c   :  { %v261_v57 = vpop.f32.mrf.mxu2 }
 0x36d   :  { %v269_v58 = vmul.f32 %v267_v50, %v261_v57 }
 0x36f   :  { %v271_v59 = vsel %vm270_vm3, %v269_v58, -inf }
 0x370   :  { %272 = vmax.xlane.f32.xlu0 %v271_v59 }
 0x378   :  { %213 = vadd.xlane.f32.xlu0 %v212_v61 }
 0x38c   :  { %226 = vperm.xlu0 %1732, %v223_v45  }
 0x3e3   :  { %v273_v62 = vpop.xlane.xlu0 %272 }
 0x3e4   :  { %v274_v63 = vsub.f32 %v269_v58, %v273_v62 }
 0x3e6   :  { %v275_v1 = vmul.f32 1.442695, %v274_v63 }
 0x3e8   :  { %1770 = vpow2.f32 %v275_v1 }
 0x3eb   :  { %v214_v12 = vpop.xlane.xlu0 %213 }
 0x3ee   :  { %v1771_v2 = vpop.eup %1770 }
 0x3ef   :  { %v277_v3 = vsel %vm270_vm3, %v1771_v2, 0.0 }
 0x3f0   :  { %278 = vadd.xlane.f32.xlu1 %v277_v3 }
 0x3fe   :  { %v227_v16 = vpop.permute.xlu0 %226 }
 0x3ff   :  { %v229_v27 = vmul.f32 0.25, %v227_v16 }
 0x409   :  { %219 = vperm.xlu1 %1731, %v195_v43  }
 0x411   :  { %1735 = vset.pattern.permute.xlu1 %v2022_v44 }
 0x463   :  { %v279_v7 = vpop.xlane.xlu1 %278 }
 0x464   :  { %1772 = vrcp.f32 %v279_v7 }
 0x465   :  { %1774 = vrcp.f32 %v214_v12 }
 0x46a   :  { %v1773_v8 = vpop.eup %1772 }
 0x46b   :  { %v281_v9 = vmul.f32 %v1773_v8, %v1771_v2  ;;  %v1775_v14 = vpop.eup %1774 }
 0x46c   :  { %v216_v23 = vmul.f32 %v1775_v14, %v1769_v60 }
 0x46d   :  { %v286_v11 = vmul.f32 %v284_v51, %v281_v9 }
 0x46f   :  { %v2173_v13 = vadd.f32 %v291_v10, %v286_v11 }
 0x471   :  { %1674 = vmatmul.msk.f32.vlgmr.msra.gmra.mxu3 %vm241_vm2, %v2173_v13 }
 0x472   :  { %583 = vmatpush.msra.mxu3 %v2099_v18 }
 0x474   :  { %584 = vmatpush.msra.mxu3 %v2105_v20 }
 0x476   :  { %585 = vmatpush.msra.mxu3 %v2109_v22 }
 0x478   :  { %586 = vmatpush.msra.mxu3 %v2118_v26 }
 0x47b   :  { %v220_v24 = vpop.permute.xlu1 %219 }
 0x47c   :  { %v222_v30 = vmul.f32 %v220_v24, %v216_v23 }
 0x47e   :  { %v2181_v31 = vadd.f32 %v229_v27, %v222_v30 }
 0x480   :  { %v235_v33 = vmul.f32 %v233_v32, %v2181_v31 }
 0x482   :  { %v236_v34 = vsel %vm205_vm1, %v235_v33, 0.0 }
 0x483   :  { %237 = vadd.xlane.f32.xlu1 %v236_v34 }
 0x4f4   :  { %v313_v37 = vpop.f32.mrf.mxu3 }
 0x4f5   :  { %v320_v39 = vadd.f32 %v313_v37, %v187_v36 }
 0x4f6   :  { %v2189_v42 = vpop.xlane.xlu1 %237 }
 0x4f7   :  { %v317_v43 = vsub.f32 %v316_v38, %v2189_v42  ;;  %v323_v45 = vadd.f32 %v322_v40, %v320_v39 }
 0x4f9   :  { %v326_v48 = vmul.f32 %v2187_v41, %v317_v43 }
 0x4fb   :  { %v327_v49 = vadd.f32 %v326_v48, %v323_v45 }
 0x4fd   :  { %v328_v50 = vadd.f32 %v327_v49, %v2088_v5 }
 0x4ff   :  { %1776 = vtanh.f32 %v328_v50 }
 0x505   :  { %v1777_v51 = vpop.eup %1776 }
 0x506   :  { %334 = vrot.lane.b32.xlu2 %v1777_v51, %s2018_s26  ;;  %v330_v53 = vadd.f32 1.0, %v1777_v51 }
 0x508   :  { %v331_v54 = vmul.f32 0.5, %v330_v53 }
 0x50a   :  { %v332_v57 = vmul.f32 %v331_v54, %v2093_v15 }
 0x560   :  { %v335_v55 = vpop.permute.xlu2 %334 }
 0x561   :  { %v337_v56 = vmul.f32 %v335_v55, %v331_v54 }
 0x563   :  { %339 = vrot.lane.b32.xlu2 %v337_v56, %s2019_s27 }
 0x5bd   :  { %v340_v58 = vpop.permute.xlu2 %339 }
 0x5be   :  { %v2197_v59 = vadd.f32 %v340_v58, %v332_v57 }
 0x5c0   :  { %1778 = vtanh.f32 %v2197_v59 }
 0x5c6   :  { %v1779_v60 = vpop.eup %1778 }
 0x5c7   :  { %345 = vrot.lane.b32.xlu0 %v1779_v60, %s2018_s26 }
 0x639   :  { %v346_v61 = vpop.permute.xlu0 %345 }
 0x63a   :  { %v348_v62 = vmul.f32 %v346_v61, %v331_v54 }
 0x63c   :  { %350 = vrot.lane.b32.xlu2 %v348_v62, %s2019_s27 }
 0x696   :  { %v351_v63 = vpop.permute.xlu2 %350 }
 0x697   :  { %1677 = vmatmul.msk.f32.vlgmr.msrb.gmra.mxu2 %vm147_vm0, %v351_v63  ;;  %1678 = vmatmul.msk.f32.vlgmr.msrb.gmra.mxu3 %vm147_vm0, %v351_v63 }
 0x698   :  { %760 = vmatpush.msrb.mxu2 %v2097_v17  ;;  %780 = vmatpush.msrb.mxu3 %v2099_v18 }
 0x69a   :  { %761 = vmatpush.msrb.mxu2 %v2101_v19  ;;  %781 = vmatpush.msrb.mxu3 %v2105_v20 }
 0x69c   :  { %762 = vmatpush.msrb.mxu2 %v2107_v21  ;;  %782 = vmatpush.msrb.mxu3 %v2109_v22 }
 0x69e   :  { %763 = vmatpush.msrb.mxu2 %v2116_v25  ;;  %783 = vmatpush.msrb.mxu3 %v2118_v26 }
 0x71a   :  { %v371_v15 = vpop.f32.mrf.mxu2 }
 0x71b   :  { %v394_v1 = vadd.f32 %v371_v15, %v2126_v29 }
 0x71d   :  { %1780 = vtanh.f32 %v394_v1  ;;  %v399_v2 = vand.u32 2147483647, %v394_v1  ;;  %v398_v12 = vmax.f32 %v394_v1, 0.0  ;;  %v407_v27 = vsel %vm205_vm1, %v394_v1, -inf }
 0x71f   :  { %v400_v3 = vsub.f32 0.0, %v399_v2 }
 0x721   :  { %v401_v7 = vmul.f32 1.442695, %v400_v3 }
 0x723   :  { %v1781_v8 = vpop.eup %1780  ;;  %1782 = vpow2.f32 %v401_v7 }
 0x724   :  { %440 = vrot.lane.b32.xlu0 %v1781_v8, %s2021_s28  ;;  %v396_v23 = vadd.f32 1.0, %v1781_v8 }
 0x726   :  { %v397_v24 = vmul.f32 0.5, %v396_v23 }
 0x728   :  { %v424_v30 = vsub.f32 1.0, %v397_v24 }
 0x729   :  { %v1783_v9 = vpop.eup %1782 }
 0x72a   :  { %v403_v10 = vadd.f32 1.0, %v1783_v9 }
 0x72c   :  { %1784 = vlog2.f32 %v403_v10 }
 0x732   :  { %v1785_v11 = vpop.eup %1784 }
 0x733   :  { %v405_v14 = vmul.f32 0.6931472, %v1785_v11 }
 0x735   :  { %v406_v16 = vadd.f32 %v405_v14, %v398_v12  ;;  %v520_v12 = vstv %s1681_s9  ;;  %v391_v14 = vpop.f32.mrf.mxu3 }
 0x737   :  { %466 = vperm.xlu2 %1733, %v406_v16   ;;  %v515_v16 = vstv %s1676_s10 }
 0x73f   :  { %1734 = vset.pattern.permute.xlu2 %v2022_v44 }
 0x740   :  { %482 = vperm.xlu2 %1734, %v397_v24  }
 0x748   :  { %1736 = vset.pattern.permute.xlu2 %v2024_v52 }
 0x769   :  { %408 = vmax.xlane.f32.xlu2 %v407_v27 }
 0x781   :  { %427 = vperm.xlu2 %1736, %v424_v30  }
 0x789   :  { %1737 = vset.pattern.permute.xlu2 %v2020_v28 }
 0x791   :  { %v467_v33 = vpop.permute.xlu2 %466 }
 0x796   :  { %v441_v32 = vpop.permute.xlu0 %440 }
 0x797   :  { %1679 = vmatmul.msk.f32.vlgmr.msrb.gmra.mxu0 %vm241_vm2, %v441_v32 }
 0x798   :  { %852 = vmatpush.msrb.mxu0 %v2132_v46 }
 0x79a   :  { %853 = vmatpush.msrb.mxu0 %v2136_v47  ;;  %v483_v45 = vpop.permute.xlu2 %482 }
 0x7dc   :  { %v409_v48 = vpop.xlane.xlu2 %408 }
 0x7dd   :  { %v410_v49 = vsub.f32 %v394_v1, %v409_v48 }
 0x7df   :  { %v411_v50 = vmul.f32 1.442695, %v410_v49 }
 0x7e4   :  { %v428_v1 = vpop.permute.xlu2 %427 }
 0x7e5   :  { %v430_v3 = vmul.f32 %v428_v1, %v2181_v31 }
 0x814   :  { %v461_v34 = vpop.f32.mrf.mxu0 }
 0x815   :  { %v469_v35 = vmul.f32 %v467_v33, %v461_v34 }
 0x817   :  { %v470_v36 = vsel %vm270_vm3, %v469_v35, -inf }
 0x818   :  { %471 = vmax.xlane.f32.xlu0 %v470_v36 }
 0x82c   :  { %420 = vperm.xlu0 %1732, %v397_v24   ;;  %v521_v24 = vmul.f32 %v520_v12, %v2083_v0 }
 0x834   :  { %433 = vrot.lane.b32.xlu0 %v1781_v8, %s2023_s29 }
 0x835   :  { %1739 = vset.pattern.permute.xlu0 %v2022_v44 }
 0x88b   :  { %v472_v37 = vpop.xlane.xlu0 %471 }
 0x88c   :  { %v473_v38 = vsub.f32 %v469_v35, %v472_v37 }
 0x88e   :  { %v474_v39 = vmul.f32 1.442695, %v473_v38 }
 0x890   :  { %1786 = vpow2.f32 %v474_v39 }
 0x891   :  { %1788 = vpow2.f32 %v411_v50 }
 0x896   :  { %v1787_v40 = vpop.eup %1786 }
 0x897   :  { %v476_v43 = vsel %vm270_vm3, %v1787_v40, 0.0  ;;  %v1789_v51 = vpop.eup %1788 }
 0x898   :  { %477 = vadd.xlane.f32.xlu1 %v476_v43  ;;  %v413_v53 = vsel %vm205_vm1, %v1789_v51, 0.0 }
 0x89e   :  { %v421_v63 = vpop.permute.xlu0 %420 }
 0x8b1   :  { %487 = vperm.xlu1 %1735, %v424_v30  }
 0x8b9   :  { %1741 = vset.pattern.permute.xlu1 %v2024_v52 }
 0x8db   :  { %414 = vadd.xlane.f32.xlu1 %v413_v53 }
 0x90b   :  { %v478_v54 = vpop.xlane.xlu1 %477 }
 0x90c   :  { %1790 = vrcp.f32 %v478_v54 }
 0x912   :  { %v1791_v55 = vpop.eup %1790 }
 0x913   :  { %v480_v56 = vmul.f32 %v1791_v55, %v1787_v40 }
 0x915   :  { %v485_v58 = vmul.f32 %v483_v45, %v480_v56 }
 0x923   :  { %v488_v57 = vpop.permute.xlu1 %487 }
 0x924   :  { %v490_v60 = vmul.f32 %v488_v57, %v2173_v13  ;;  %v434_v13 = vpop.permute.xlu0 %433 }
 0x926   :  { %v2228_v61 = vadd.f32 %v490_v60, %v485_v58 }
 0x928   :  { %1680 = vmatmul.msk.f32.vlgmr.msrb.gmra.mxu1 %vm241_vm2, %v2228_v61 }
 0x929   :  { %903 = vmatpush.msrb.mxu1 %v2159_v4 }
 0x92b   :  { %904 = vmatpush.msrb.mxu1 %v2161_v6 }
 0x94e   :  { %v415_v62 = vpop.xlane.xlu1 %414 }
 0x94f   :  { %1792 = vrcp.f32 %v415_v62 }
 0x955   :  { %v1793_v15 = vpop.eup %1792 }
 0x956   :  { %v417_v2 = vmul.f32 %v1793_v15, %v1789_v51 }
 0x958   :  { %v423_v7 = vmul.f32 %v421_v63, %v417_v2 }
 0x95a   :  { %v2235_v8 = vadd.f32 %v430_v3, %v423_v7 }
 0x95c   :  { %v436_v9 = vmul.f32 %v434_v13, %v2235_v8 }
 0x95e   :  { %v437_v10 = vsel %vm205_vm1, %v436_v9, 0.0 }
 0x95f   :  { %438 = vadd.xlane.f32.xlu0 %v437_v10 }
 0x9a5   :  { %v512_v11 = vpop.f32.mrf.mxu1 }
 0x9a6   :  { %v519_v23 = vadd.f32 %v512_v11, %v391_v14 }
 0x9a8   :  { %v522_v32 = vadd.f32 %v521_v24, %v519_v23 }
 0x9d2   :  { %v2240_v27 = vpop.xlane.xlu0 %438 }
 0x9d3   :  { %v516_v30 = vsub.f32 %v515_v16, %v2240_v27 }
 0x9d5   :  { %v523_v33 = vmul.f32 %v516_v30, %v2187_v41 }
 0x9d7   :  { %v524_v34 = vadd.f32 %v523_v33, %v522_v32 }
 0x9d9   :  { %v525_v35 = vadd.f32 %v524_v34, %v2088_v5 }
 0x9db   :  { %1794 = vtanh.f32 %v525_v35 }
 0x9e1   :  { %v1795_v36 = vpop.eup %1794 }
 0x9e2   :  { %531 = vrot.lane.b32.xlu1 %v1795_v36, %s2018_s26  ;;  %v527_v37 = vadd.f32 1.0, %v1795_v36 }
 0x9e4   :  { %v528_v38 = vmul.f32 0.5, %v527_v37 }
 0x9e6   :  { %v529_v43 = vmul.f32 %v528_v38, %v2197_v59 }
 0xa54   :  { %v532_v39 = vpop.permute.xlu1 %531 }
 0xa55   :  { %v534_v40 = vmul.f32 %v532_v39, %v528_v38 }
 0xa57   :  { %536 = vrot.lane.b32.xlu2 %v534_v40, %s2019_s27 }
 0xab1   :  { %v537_v45 = vpop.permute.xlu2 %536 }
 0xab2   :  { %v2248_v48 = vadd.f32 %v537_v45, %v529_v43 }
 0xab4   :  { %1796 = vtanh.f32 %v2248_v48 }
 0xaba   :  { %v1797_v49 = vpop.eup %1796 }
 0xabb   :  { %542 = vrot.lane.b32.xlu2 %v1797_v49, %s2018_s26 }
 0xb15   :  { %v543_v50 = vpop.permute.xlu2 %542 }
 0xb16   :  { %v545_v51 = vmul.f32 %v543_v50, %v528_v38 }
 0xb18   :  { %547 = vrot.lane.b32.xlu2 %v545_v51, %s2019_s27 }
 0xb72   :  { %v548_v53 = vpop.permute.xlu2 %547 }
 0xb73   :  { %1683 = vmatmul.msk.f32.vlgmr.msra.gmra.mxu2 %vm147_vm0, %v548_v53  ;;  %1684 = vmatmul.msk.f32.vlgmr.msra.gmra.mxu3 %vm147_vm0, %v548_v53 }
 0xb74   :  { %957 = vmatpush.msra.mxu2 %v2097_v17  ;;  %977 = vmatpush.msra.mxu3 %v2099_v18 }
 0xb76   :  { %958 = vmatpush.msra.mxu2 %v2101_v19  ;;  %978 = vmatpush.msra.mxu3 %v2105_v20 }
 0xb78   :  { %959 = vmatpush.msra.mxu2 %v2107_v21  ;;  %979 = vmatpush.msra.mxu3 %v2109_v22 }
 0xb7a   :  { %960 = vmatpush.msra.mxu2 %v2116_v25  ;;  %980 = vmatpush.msra.mxu3 %v2118_v26 }
 0xbf6   :  { %v568_v59 = vpop.f32.mrf.mxu2 }
 0xbf7   :  { %v591_v54 = vadd.f32 %v568_v59, %v2126_v29 }
 0xbf9   :  { %1798 = vtanh.f32 %v591_v54  ;;  %v596_v55 = vand.u32 2147483647, %v591_v54  ;;  %v595_v15 = vmax.f32 %v591_v54, 0.0  ;;  %v604_v13 = vsel %vm205_vm1, %v591_v54, -inf }
 0xbfb   :  { %v597_v56 = vsub.f32 0.0, %v596_v55 }
 0xbfd   :  { %v598_v57 = vmul.f32 1.442695, %v597_v56 }
 0xbff   :  { %v1799_v58 = vpop.eup %1798  ;;  %1800 = vpow2.f32 %v598_v57 }
 0xc00   :  { %637 = vrot.lane.b32.xlu1 %v1799_v58, %s2021_s28  ;;  %v593_v3 = vadd.f32 1.0, %v1799_v58 }
 0xc02   :  { %v594_v7 = vmul.f32 0.5, %v593_v3 }
 0xc04   :  { %v621_v34 = vsub.f32 1.0, %v594_v7 }
 0xc05   :  { %v1801_v60 = vpop.eup %1800 }
 0xc06   :  { %v600_v62 = vadd.f32 1.0, %v1801_v60 }
 0xc08   :  { %1802 = vlog2.f32 %v600_v62 }
 0xc0e   :  { %v1803_v63 = vpop.eup %1802 }
 0xc0f   :  { %v602_v1 = vmul.f32 0.6931472, %v1803_v63 }
 0xc11   :  { %v603_v2 = vadd.f32 %v602_v1, %v595_v15  ;;  %v717_v1 = vstv %s1687_s11 }
 0xc13   :  { %663 = vperm.xlu2 %1737, %v603_v2   ;;  %v588_v2 = vpop.f32.mrf.mxu3 }
 0xc1b   :  { %1738 = vset.pattern.permute.xlu2 %v2022_v44 }
 0xc1c   :  { %679 = vperm.xlu2 %1738, %v594_v7  }
 0xc45   :  { %605 = vmax.xlane.f32.xlu2 %v604_v13 }
 0xc5d   :  { %630 = vrot.lane.b32.xlu2 %v1799_v58, %s2023_s29 }
 0xc6d   :  { %v664_v10 = vpop.permute.xlu2 %663 }
 0xc72   :  { %v638_v9 = vpop.permute.xlu1 %637 }
 0xc73   :  { %1685 = vmatmul.msk.f32.vlgmr.msra.gmra.mxu0 %vm241_vm2, %v638_v9  ;;  %v718_v9 = vmul.f32 %v717_v1, %v2083_v0 }
 0xc74   :  { %1049 = vmatpush.msra.mxu0 %v2132_v46 }
 0xc76   :  { %1050 = vmatpush.msra.mxu0 %v2136_v47  ;;  %v680_v11 = vpop.permute.xlu2 %679 }
 0xcb8   :  { %v606_v12 = vpop.xlane.xlu2 %605 }
 0xcb9   :  { %v607_v14 = vsub.f32 %v591_v54, %v606_v12 }
 0xcbb   :  { %v608_v16 = vmul.f32 1.442695, %v607_v14 }
 0xcbd   :  { %1804 = vpow2.f32 %v608_v16 }
 0xcc0   :  { %v631_v63 = vpop.permute.xlu2 %630 }
 0xcc3   :  { %v1805_v32 = vpop.eup %1804 }
 0xcc4   :  { %v610_v33 = vsel %vm205_vm1, %v1805_v32, 0.0 }
 0xcf0   :  { %v658_v23 = vpop.f32.mrf.mxu0 }
 0xcf1   :  { %v666_v24 = vmul.f32 %v664_v10, %v658_v23 }
 0xcf3   :  { %v667_v30 = vsel %vm270_vm3, %v666_v24, -inf }
 0xcf4   :  { %668 = vmax.xlane.f32.xlu1 %v667_v30 }
 0xcfc   :  { %611 = vadd.xlane.f32.xlu1 %v610_v33 }
 0xd15   :  { %624 = vperm.xlu1 %1741, %v621_v34  }
 0xd1d   :  { %1742 = vset.pattern.permute.xlu1 %v2020_v28 }
 0xd67   :  { %v669_v35 = vpop.xlane.xlu1 %668 }
 0xd68   :  { %v670_v36 = vsub.f32 %v666_v24, %v669_v35 }
 0xd6a   :  { %v671_v37 = vmul.f32 1.442695, %v670_v36 }
 0xd6c   :  { %1806 = vpow2.f32 %v671_v37 }
 0xd6f   :  { %v612_v45 = vpop.xlane.xlu1 %611 }
 0xd72   :  { %v1807_v38 = vpop.eup %1806 }
 0xd73   :  { %v673_v39 = vsel %vm270_vm3, %v1807_v38, 0.0 }
 0xd74   :  { %674 = vadd.xlane.f32.xlu0 %v673_v39 }
 0xd87   :  { %v625_v55 = vpop.permute.xlu1 %624 }
 0xd88   :  { %684 = vperm.xlu0 %1739, %v621_v34   ;;  %v627_v58 = vmul.f32 %v625_v55, %v2235_v8 }
 0xd90   :  { %1740 = vset.pattern.permute.xlu0 %v2024_v52 }
 0xd91   :  { %617 = vperm.xlu0 %1740, %v594_v7   ;;  %v712_v7 = vstv %s1682_s12 }
 0xd99   :  { %1743 = vset.pattern.permute.xlu0 %v2022_v44 }
 0xde7   :  { %v675_v40 = vpop.xlane.xlu0 %674 }
 0xde8   :  { %1808 = vrcp.f32 %v675_v40 }
 0xde9   :  { %1810 = vrcp.f32 %v612_v45 }
 0xdee   :  { %v1809_v43 = vpop.eup %1808 }
 0xdef   :  { %v677_v49 = vmul.f32 %v1809_v43, %v1807_v38  ;;  %v1811_v54 = vpop.eup %1810 }
 0xdf0   :  { %v614_v56 = vmul.f32 %v1811_v54, %v1805_v32 }
 0xdf1   :  { %v682_v51 = vmul.f32 %v680_v11, %v677_v49 }
 0xdfa   :  { %v685_v50 = vpop.permute.xlu0 %684 }
 0xdfb   :  { %v687_v53 = vmul.f32 %v685_v50, %v2228_v61 }
 0xdfd   :  { %v2278_v59 = vadd.f32 %v687_v53, %v682_v51 }
 0xdff   :  { %1686 = vmatmul.msk.f32.vlgmr.msra.gmra.mxu1 %vm241_vm2, %v2278_v59 }
 0xe00   :  { %1100 = vmatpush.msra.mxu1 %v2159_v4 }
 0xe02   :  { %1101 = vmatpush.msra.mxu1 %v2161_v6 }
 0xe03   :  { %v618_v57 = vpop.permute.xlu0 %617 }
 0xe04   :  { %v620_v60 = vmul.f32 %v618_v57, %v614_v56 }
 0xe06   :  { %v2285_v62 = vadd.f32 %v627_v58, %v620_v60 }
 0xe08   :  { %v633_v61 = vmul.f32 %v631_v63, %v2285_v62 }
 0xe0a   :  { %v634_v15 = vsel %vm205_vm1, %v633_v61, 0.0 }
 0xe0b   :  { %635 = vadd.xlane.f32.xlu0 %v634_v15 }
 0xe7c   :  { %v709_v3 = vpop.f32.mrf.mxu1 }
 0xe7d   :  { %v716_v13 = vadd.f32 %v709_v3, %v588_v2 }
 0xe7e   :  { %v2290_v10 = vpop.xlane.xlu0 %635 }
 0xe7f   :  { %v713_v11 = vsub.f32 %v712_v7, %v2290_v10  ;;  %v719_v12 = vadd.f32 %v718_v9, %v716_v13 }
 0xe81   :  { %v720_v14 = vmul.f32 %v713_v11, %v2187_v41 }
 0xe83   :  { %v721_v16 = vadd.f32 %v720_v14, %v719_v12 }
 0xe85   :  { %v722_v23 = vadd.f32 %v721_v16, %v2088_v5 }
 0xe87   :  { %1812 = vtanh.f32 %v722_v23 }
 0xe8d   :  { %v1813_v24 = vpop.eup %1812 }
 0xe8e   :  { %728 = vrot.lane.b32.xlu2 %v1813_v24, %s2018_s26  ;;  %v724_v30 = vadd.f32 1.0, %v1813_v24 }
 0xe90   :  { %v725_v32 = vmul.f32 0.5, %v724_v30 }
 0xe92   :  { %v726_v0 = vmul.f32 %v725_v32, %v2248_v48 }
 0xee8   :  { %v729_v33 = vpop.permute.xlu2 %728 }
 0xee9   :  { %v731_v34 = vmul.f32 %v729_v33, %v725_v32 }
 0xeeb   :  { %733 = vrot.lane.b32.xlu1 %v731_v34, %s2019_s27 }
 0xf5d   :  { %v734_v35 = vpop.permute.xlu1 %733 }
 0xf5e   :  { %v2298_v36 = vadd.f32 %v734_v35, %v726_v0 }
 0xf60   :  { %1814 = vtanh.f32 %v2298_v36 }
 0xf66   :  { %v1815_v37 = vpop.eup %1814 }
 0xf67   :  { %739 = vrot.lane.b32.xlu2 %v1815_v37, %s2018_s26 }
 0xfc1   :  { %v740_v38 = vpop.permute.xlu2 %739 }
 0xfc2   :  { %v742_v39 = vmul.f32 %v740_v38, %v725_v32 }
 0xfc4   :  { %744 = vrot.lane.b32.xlu1 %v742_v39, %s2019_s27 }
0x1036   :  { %v745_v40 = vpop.permute.xlu1 %744 }
0x1037   :  { %1689 = vmatmul.msk.f32.vlgmr.msrb.gmra.mxu2 %vm147_vm0, %v745_v40  ;;  %1690 = vmatmul.msk.f32.vlgmr.msrb.gmra.mxu3 %vm147_vm0, %v745_v40 }
0x1038   :  { %1154 = vmatpush.msrb.mxu2 %v2097_v17  ;;  %1174 = vmatpush.msrb.mxu3 %v2099_v18 }
0x103a   :  { %1155 = vmatpush.msrb.mxu2 %v2101_v19  ;;  %1175 = vmatpush.msrb.mxu3 %v2105_v20 }
0x103c   :  { %1156 = vmatpush.msrb.mxu2 %v2107_v21  ;;  %1176 = vmatpush.msrb.mxu3 %v2109_v22 }
0x103e   :  { %1157 = vmatpush.msrb.mxu2 %v2116_v25  ;;  %1177 = vmatpush.msrb.mxu3 %v2118_v26 }
0x10ba   :  { %v765_v48 = vpop.f32.mrf.mxu2 }
0x10bb   :  { %v788_v43 = vadd.f32 %v765_v48, %v2126_v29 }
0x10bd   :  { %1816 = vtanh.f32 %v788_v43  ;;  %v793_v45 = vand.u32 2147483647, %v788_v43  ;;  %v792_v26 = vmax.f32 %v788_v43, 0.0  ;;  %v801_v15 = vsel %vm205_vm1, %v788_v43, -inf }
0x10bf   :  { %v794_v17 = vsub.f32 0.0, %v793_v45  ;;  %v914_v45 = vstv %s1693_s13 }
0x10c1   :  { %v795_v49 = vmul.f32 1.442695, %v794_v17  ;;  %v785_v17 = vpop.f32.mrf.mxu3 }
0x10c3   :  { %v1817_v18 = vpop.eup %1816  ;;  %1818 = vpow2.f32 %v795_v49  ;;  %v909_v49 = vstv %s1688_s14 }
0x10c4   :  { %834 = vrot.lane.b32.xlu2 %v1817_v18, %s2021_s28  ;;  %v790_v19 = vadd.f32 1.0, %v1817_v18 }
0x10c6   :  { %v791_v20 = vmul.f32 0.5, %v790_v19  ;;  %v2342_v19 = vld [vmem:[%s2528_s5] sm:$0xf]  ;;  %s1699_s5 = sld [smem:[#allocation2 + $0x5]] }
0x10c8   :  { %876 = vperm.xlu0 %1743, %v791_v20   ;;  %v818_v58 = vsub.f32 1.0, %v791_v20 }
0x10c9   :  { %v1819_v21 = vpop.eup %1818 }
0x10ca   :  { %v797_v22 = vadd.f32 1.0, %v1819_v21 }
0x10cc   :  { %1820 = vlog2.f32 %v797_v22 }
0x10d0   :  { %1746 = vset.pattern.permute.xlu0 %v2020_v28 }
0x10d2   :  { %v1821_v25 = vpop.eup %1820 }
0x10d3   :  { %v799_v50 = vmul.f32 0.6931472, %v1821_v25 }
0x10d5   :  { %v800_v51 = vadd.f32 %v799_v50, %v792_v26 }
0x10d7   :  { %860 = vperm.xlu1 %1742, %v800_v51  }
0x10df   :  { %1744 = vset.pattern.permute.xlu1 %v2024_v52 }
0x111e   :  { %v835_v53 = vpop.permute.xlu2 %834 }
0x111f   :  { %1691 = vmatmul.msk.f32.vlgmr.msrb.gmra.mxu0 %vm241_vm2, %v835_v53 }
0x1120   :  { %1246 = vmatpush.msrb.mxu0 %v2132_v46 }
0x1122   :  { %1247 = vmatpush.msrb.mxu0 %v2136_v47 }
0x113a   :  { %v877_v9 = vpop.permute.xlu0 %876 }
0x1149   :  { %v861_v54 = vpop.permute.xlu1 %860 }
0x119c   :  { %v855_v55 = vpop.f32.mrf.mxu0 }
0x119d   :  { %v863_v56 = vmul.f32 %v861_v54, %v855_v55 }
0x119f   :  { %v864_v57 = vsel %vm270_vm3, %v863_v56, -inf }
0x11a0   :  { %865 = vmax.xlane.f32.xlu2 %v864_v57 }
0x11b8   :  { %881 = vperm.xlu2 %1738, %v818_v58  }
0x11c0   :  { %1745 = vset.pattern.permute.xlu2 %v2024_v52 }
0x11c1   :  { %821 = vperm.xlu2 %1745, %v818_v58  }
0x11c9   :  { %827 = vrot.lane.b32.xlu2 %v1817_v18, %s2023_s29 }
0x1213   :  { %v866_v60 = vpop.xlane.xlu2 %865 }
0x1214   :  { %v867_v63 = vsub.f32 %v863_v56, %v866_v60 }
0x1216   :  { %v868_v61 = vmul.f32 1.442695, %v867_v63 }
0x1218   :  { %1822 = vpow2.f32 %v868_v61 }
0x121b   :  { %v882_v3 = vpop.permute.xlu2 %881 }
0x121c   :  { %v884_v12 = vmul.f32 %v882_v3, %v2278_v59  ;;  %v1898_v3 = vld [vmem:[#allocation10 + $0x28] sm:$0xff] }
0x121e   :  { %v1823_v46 = vpop.eup %1822 }
0x121f   :  { %v870_v47 = vsel %vm270_vm3, %v1823_v46, 0.0 }
0x1220   :  { %871 = vadd.xlane.f32.xlu1 %v870_v47 }
0x1223   :  { %v822_v33 = vpop.permute.xlu2 %821 }
0x1224   :  { %v824_v35 = vmul.f32 %v822_v33, %v2285_v62 }
0x1228   :  { %802 = vmax.xlane.f32.xlu1 %v801_v15 }
0x122b   :  { %v828_v39 = vpop.permute.xlu2 %827 }
0x1241   :  { %814 = vperm.xlu1 %1744, %v791_v20   ;;  %v915_v20 = vmul.f32 %v2342_v19, %v914_v45 }
0x1249   :  { %1747 = vset.pattern.permute.xlu1 %v2022_v44 }
0x1293   :  { %v872_v1 = vpop.xlane.xlu1 %871 }
0x1294   :  { %1824 = vrcp.f32 %v872_v1  ;;  %v2360_v1 = vld [vmem:[#allocation10 + $0x30] sm:$0xff] }
0x129a   :  { %v1825_v2 = vpop.eup %1824 }
0x129b   :  { %v874_v7 = vmul.f32 %v1825_v2, %v1823_v46  ;;  %v803_v13 = vpop.xlane.xlu1 %802  ;;  %v2363_v2 = vld [vmem:[#allocation10 + $0x20] sm:$0xff] }
0x129c   :  { %v804_v11 = vsub.f32 %v788_v43, %v803_v13  ;;  %v1900_v13 = vld [vmem:[#allocation10 + $0x18] sm:$0xff] }
0x129d   :  { %v879_v14 = vmul.f32 %v877_v9, %v874_v7  ;;  %v2366_v7 = vld [vmem:[#allocation10 + $0x10] sm:$0xff]  ;;  %v2369_v9 = vld [vmem:[#allocation10] sm:$0xff] }
0x129e   :  { %v805_v16 = vmul.f32 1.442695, %v804_v11  ;;  %v1902_v11 = vld [vmem:[#allocation10 + $0x8] sm:$0xff] }
0x129f   :  { %v2327_v23 = vadd.f32 %v884_v12, %v879_v14 }
0x12a0   :  { %1826 = vpow2.f32 %v805_v16 }
0x12a1   :  { %1692 = vmatmul.msk.f32.vlgmr.msrb.gmra.mxu1 %vm241_vm2, %v2327_v23 }
0x12a2   :  { %1297 = vmatpush.msrb.mxu1 %v2159_v4 }
0x12a4   :  { %1298 = vmatpush.msrb.mxu1 %v2161_v6 }
0x12a6   :  { %v1827_v24 = vpop.eup %1826 }
0x12a7   :  { %v807_v30 = vsel %vm205_vm1, %v1827_v24, 0.0 }
0x12a8   :  { %808 = vadd.xlane.f32.xlu0 %v807_v30 }
0x12b3   :  { %v815_v0 = vpop.permute.xlu1 %814 }
0x131b   :  { %v809_v32 = vpop.xlane.xlu0 %808 }
0x131c   :  { %1828 = vrcp.f32 %v809_v32 }
0x131e   :  { %v906_v43 = vpop.f32.mrf.mxu1 }
0x131f   :  { %v913_v18 = vadd.f32 %v906_v43, %v785_v17  ;;  %v1903_v17 = vld [vmem:[#allocation7 + $0x8] sm:$0xff] }
0x1321   :  { %v916_v25 = vadd.f32 %v915_v20, %v913_v18 }
0x1322   :  { %v1829_v59 = vpop.eup %1828 }
0x1323   :  { %v811_v34 = vmul.f32 %v1829_v59, %v1827_v24 }
0x1325   :  { %v817_v37 = vmul.f32 %v815_v0, %v811_v34 }
0x1327   :  { %v2335_v38 = vadd.f32 %v824_v35, %v817_v37 }
0x1329   :  { %v830_v40 = vmul.f32 %v828_v39, %v2335_v38 }
0x132b   :  { %v831_v48 = vsel %vm205_vm1, %v830_v40, 0.0 }
0x132c   :  { %832 = vadd.xlane.f32.xlu1 %v831_v48 }
0x139f   :  { %v2345_v21 = vpop.xlane.xlu1 %832 }
0x13a0   :  { %v910_v22 = vsub.f32 %v909_v49, %v2345_v21  ;;  %v1904_v49 = vld [vmem:[#allocation7] sm:$0xff] }
0x13a2   :  { %v917_v26 = vmul.f32 %v910_v22, %v2187_v41 }
0x13a4   :  { %v918_v50 = vadd.f32 %v917_v26, %v916_v25 }
0x13a6   :  { %v919_v51 = vadd.f32 %v918_v50, %v2088_v5 }
0x13a8   :  { %1830 = vtanh.f32 %v919_v51 }
0x13ae   :  { %v1831_v53 = vpop.eup %1830 }
0x13af   :  { %925 = vrot.lane.b32.xlu2 %v1831_v53, %s2018_s26  ;;  %v921_v54 = vadd.f32 1.0, %v1831_v53 }
0x13b1   :  { %v922_v55 = vmul.f32 0.5, %v921_v54 }
0x13b3   :  { %v923_v58 = vmul.f32 %v922_v55, %v2298_v36  ;;  %v1896_v36 = vld [vmem:[#allocation10 + $0x38] sm:$0xff] }
0x1409   :  { %v926_v56 = vpop.permute.xlu2 %925 }
0x140a   :  { %v928_v57 = vmul.f32 %v926_v56, %v922_v55 }
0x140c   :  { %930 = vrot.lane.b32.xlu2 %v928_v57, %s2019_s27 }
0x1466   :  { %v931_v60 = vpop.permute.xlu2 %930 }
0x1467   :  { %v2353_v63 = vadd.f32 %v931_v60, %v923_v58 }
0x1469   :  { %1832 = vtanh.f32 %v2353_v63 }
0x146f   :  { %v1833_v61 = vpop.eup %1832 }
0x1470   :  { %936 = vrot.lane.b32.xlu0 %v1833_v61, %s2018_s26 }
0x14e2   :  { %v937_v46 = vpop.permute.xlu0 %936 }
0x14e3   :  { %v939_v47 = vmul.f32 %v937_v46, %v922_v55 }
0x14e5   :  { %941 = vrot.lane.b32.xlu2 %v939_v47, %s2019_s27 }
0x153f   :  { %v942_v15 = vpop.permute.xlu2 %941 }
0x1540   :  { %1695 = vmatmul.msk.f32.vlgmr.msra.gmra.mxu2 %vm147_vm0, %v942_v15  ;;  %1696 = vmatmul.msk.f32.vlgmr.msra.gmra.mxu3 %vm147_vm0, %v942_v15 }
0x1541   :  { %1351 = vmatpush.msra.mxu2 %v2360_v1  ;;  %1371 = vmatpush.msra.mxu3 %v1896_v36 }
0x1543   :  { %1352 = vmatpush.msra.mxu2 %v2363_v2  ;;  %1372 = vmatpush.msra.mxu3 %v1898_v3 }
0x1545   :  { %1353 = vmatpush.msra.mxu2 %v2366_v7  ;;  %1373 = vmatpush.msra.mxu3 %v1900_v13 }
0x1547   :  { %1354 = vmatpush.msra.mxu2 %v2369_v9  ;;  %1374 = vmatpush.msra.mxu3 %v1902_v11 }
0x15c3   :  { %v962_v12 = vpop.f32.mrf.mxu2 }
0x15c4   :  { %v985_v14 = vadd.f32 %v962_v12, %v2126_v29 }
0x15c6   :  { %1834 = vtanh.f32 %v985_v14  ;;  %v990_v16 = vand.u32 2147483647, %v985_v14  ;;  %v989_v0 = vmax.f32 %v985_v14, 0.0  ;;  %v998_v43 = vsel %vm205_vm1, %v985_v14, -inf }
0x15c8   :  { %v991_v24 = vsub.f32 0.0, %v990_v16 }
0x15ca   :  { %v992_v30 = vmul.f32 1.442695, %v991_v24 }
0x15cc   :  { %v1835_v32 = vpop.eup %1834  ;;  %1836 = vpow2.f32 %v992_v30 }
0x15cd   :  { %1031 = vrot.lane.b32.xlu2 %v1835_v32, %s2021_s28  ;;  %v987_v39 = vadd.f32 1.0, %v1835_v32 }
0x15cf   :  { %v988_v40 = vmul.f32 0.5, %v987_v39 }
0x15d1   :  { %v1015_v48 = vsub.f32 1.0, %v988_v40 }
0x15d2   :  { %v1837_v33 = vpop.eup %1836 }
0x15d3   :  { %v994_v59 = vadd.f32 1.0, %v1837_v33 }
0x15d5   :  { %1838 = vlog2.f32 %v994_v59 }
0x15db   :  { %v1839_v34 = vpop.eup %1838 }
0x15dc   :  { %v996_v35 = vmul.f32 0.6931472, %v1839_v34 }
0x15de   :  { %v997_v37 = vadd.f32 %v996_v35, %v989_v0  ;;  %v982_v35 = vpop.f32.mrf.mxu3 }
0x15e0   :  { %1057 = vperm.xlu0 %1746, %v997_v37   ;;  %v1106_v37 = vstv %s1694_s16 }
0x15e8   :  { %1748 = vset.pattern.permute.xlu0 %v2022_v44 }
0x15e9   :  { %1078 = vperm.xlu0 %1748, %v1015_v48  }
0x15f1   :  { %1752 = vset.pattern.permute.xlu0 %v2024_v52 }
0x1613   :  { %999 = vmax.xlane.f32.xlu0 %v998_v43 }
0x1627   :  { %v1032_v45 = vpop.permute.xlu2 %1031  ;;  %1024 = vrot.lane.b32.xlu0 %v1835_v32, %s2023_s29 }
0x1628   :  { %1697 = vmatmul.msk.f32.vlgmr.msra.gmra.mxu0 %vm241_vm2, %v1032_v45 }
0x1629   :  { %1443 = vmatpush.msra.mxu0 %v1903_v17 }
0x162b   :  { %1444 = vmatpush.msra.mxu0 %v1904_v49 }
0x1652   :  { %v1058_v18 = vpop.permute.xlu0 %1057 }
0x165b   :  { %v1079_v55 = vpop.permute.xlu0 %1078 }
0x165c   :  { %v1081_v3 = vmul.f32 %v1079_v55, %v2327_v23 }
0x1686   :  { %v1000_v56 = vpop.xlane.xlu0 %999 }
0x1687   :  { %v1001_v57 = vsub.f32 %v985_v14, %v1000_v56 }
0x1689   :  { %v1002_v58 = vmul.f32 1.442695, %v1001_v57 }
0x1699   :  { %v1025_v59 = vpop.permute.xlu0 %1024 }
0x16a5   :  { %v1052_v20 = vpop.f32.mrf.mxu0 }
0x16a6   :  { %v1060_v22 = vmul.f32 %v1058_v18, %v1052_v20 }
0x16a8   :  { %v1061_v25 = vsel %vm270_vm3, %v1060_v22, -inf }
0x16a9   :  { %1062 = vmax.xlane.f32.xlu2 %v1061_v25 }
0x16c1   :  { %1011 = vperm.xlu2 %1745, %v988_v40  }
0x16c9   :  { %1018 = vperm.xlu2 %1745, %v1015_v48  }
0x16d1   :  { %1751 = vset.pattern.permute.xlu2 %v2022_v44 }
0x171c   :  { %v1063_v26 = vpop.xlane.xlu2 %1062 }
0x171d   :  { %v1064_v50 = vsub.f32 %v1060_v22, %v1063_v26 }
0x171f   :  { %v1065_v51 = vmul.f32 1.442695, %v1064_v50 }
0x1721   :  { %1840 = vpow2.f32 %v1065_v51 }
0x1722   :  { %1842 = vpow2.f32 %v1002_v58 }
0x1724   :  { %v1012_v12 = vpop.permute.xlu2 %1011 }
0x1727   :  { %v1841_v53 = vpop.eup %1840 }
0x1728   :  { %v1067_v54 = vsel %vm270_vm3, %v1841_v53, 0.0  ;;  %v1843_v60 = vpop.eup %1842 }
0x1729   :  { %1068 = vadd.xlane.f32.xlu1 %v1067_v54  ;;  %v1004_v61 = vsel %vm205_vm1, %v1843_v60, 0.0 }
0x172c   :  { %v1019_v24 = vpop.permute.xlu2 %1018 }
0x172d   :  { %v1021_v32 = vmul.f32 %v1019_v24, %v2335_v38 }
0x1742   :  { %1073 = vperm.xlu1 %1747, %v988_v40  }
0x174a   :  { %1749 = vset.pattern.permute.xlu1 %v2020_v28 }
0x176c   :  { %1005 = vadd.xlane.f32.xlu1 %v1004_v61 }
0x179c   :  { %v1069_v46 = vpop.xlane.xlu1 %1068 }
0x179d   :  { %1844 = vrcp.f32 %v1069_v46 }
0x17a3   :  { %v1845_v47 = vpop.eup %1844 }
0x17a4   :  { %v1071_v15 = vmul.f32 %v1845_v47, %v1841_v53 }
0x17b4   :  { %v1074_v36 = vpop.permute.xlu1 %1073 }
0x17b5   :  { %v1076_v13 = vmul.f32 %v1074_v36, %v1071_v15 }
0x17b7   :  { %v2385_v11 = vadd.f32 %v1081_v3, %v1076_v13 }
0x17b9   :  { %1698 = vmatmul.msk.f32.vlgmr.msra.gmra.mxu1 %vm241_vm2, %v2385_v11 }
0x17ba   :  { %1494 = vmatpush.msra.mxu1 %v2159_v4 }
0x17bc   :  { %1495 = vmatpush.msra.mxu1 %v2161_v6  ;;  %v1111_v6 = vstv %s1699_s5 }
0x17bd   :  { %v1112_v40 = vmul.f32 %v2342_v19, %v1111_v6 }
0x17df   :  { %v1006_v14 = vpop.xlane.xlu1 %1005 }
0x17e0   :  { %1846 = vrcp.f32 %v1006_v14 }
0x17e6   :  { %v1847_v16 = vpop.eup %1846 }
0x17e7   :  { %v1008_v30 = vmul.f32 %v1847_v16, %v1843_v60 }
0x17e9   :  { %v1014_v33 = vmul.f32 %v1012_v12, %v1008_v30 }
0x17eb   :  { %v2392_v23 = vadd.f32 %v1021_v32, %v1014_v33 }
0x17ed   :  { %v1027_v34 = vmul.f32 %v1025_v59, %v2392_v23 }
0x17ef   :  { %v1028_v0 = vsel %vm205_vm1, %v1027_v34, 0.0 }
0x17f0   :  { %1029 = vadd.xlane.f32.xlu2 %v1028_v0 }
0x1836   :  { %v1103_v4 = vpop.f32.mrf.mxu1 }
0x1837   :  { %v1110_v39 = vadd.f32 %v1103_v4, %v982_v35 }
0x1839   :  { %v1113_v45 = vadd.f32 %v1112_v40, %v1110_v39 }
0x1863   :  { %v2397_v48 = vpop.xlane.xlu2 %1029 }
0x1864   :  { %v1107_v43 = vsub.f32 %v1106_v37, %v2397_v48 }
0x1866   :  { %v1114_v17 = vmul.f32 %v1107_v43, %v2187_v41 }
0x1868   :  { %v1115_v49 = vadd.f32 %v1114_v17, %v1113_v45 }
0x186a   :  { %v1116_v18 = vadd.f32 %v1115_v49, %v2088_v5 }
0x186c   :  { %1848 = vtanh.f32 %v1116_v18 }
0x1872   :  { %v1849_v20 = vpop.eup %1848 }
0x1873   :  { %1122 = vrot.lane.b32.xlu1 %v1849_v20, %s2018_s26  ;;  %v1118_v22 = vadd.f32 1.0, %v1849_v20 }
0x1875   :  { %v1119_v25 = vmul.f32 0.5, %v1118_v22 }
0x1877   :  { %v1120_v51 = vmul.f32 %v1119_v25, %v2353_v63 }
0x18e5   :  { %v1123_v26 = vpop.permute.xlu1 %1122 }
0x18e6   :  { %v1125_v50 = vmul.f32 %v1123_v26, %v1119_v25 }
0x18e8   :  { %1127 = vrot.lane.b32.xlu0 %v1125_v50, %s2019_s27 }
0x195a   :  { %v1128_v53 = vpop.permute.xlu0 %1127 }
0x195b   :  { %v2405_v54 = vadd.f32 %v1128_v53, %v1120_v51 }
0x195d   :  { %1850 = vtanh.f32 %v2405_v54 }
0x1963   :  { %v1851_v55 = vpop.eup %1850 }
0x1964   :  { %1133 = vrot.lane.b32.xlu0 %v1851_v55, %s2018_s26 }
0x19d6   :  { %v1134_v56 = vpop.permute.xlu0 %1133 }
0x19d7   :  { %v1136_v57 = vmul.f32 %v1134_v56, %v1119_v25 }
0x19d9   :  { %1138 = vrot.lane.b32.xlu1 %v1136_v57, %s2019_s27 }
0x1a4b   :  { %v1139_v58 = vpop.permute.xlu1 %1138 }
0x1a4c   :  { %1701 = vmatmul.msk.f32.vlgmr.msrb.gmra.mxu2 %vm147_vm0, %v1139_v58  ;;  %1702 = vmatmul.msk.f32.vlgmr.msrb.gmra.mxu3 %vm147_vm0, %v1139_v58 }
0x1a4d   :  { %1547 = vmatpush.msrb.mxu2 %v2360_v1 }
0x1a4f   :  { %1548 = vmatpush.msrb.mxu2 %v2363_v2 }
0x1a51   :  { %1549 = vmatpush.msrb.mxu2 %v2366_v7 }
0x1a53   :  { %1550 = vmatpush.msrb.mxu2 %v2369_v9 }
0x1acf   :  { %v1159_v63 = vpop.f32.mrf.mxu2 }
0x1ad0   :  { %v1182_v60 = vadd.f32 %v1159_v63, %v2126_v29 }
0x1ad2   :  { %1852 = vtanh.f32 %v1182_v60  ;;  %v1187_v61 = vand.u32 2147483647, %v1182_v60  ;;  %v1186_v2 = vmax.f32 %v1182_v60, 0.0  ;;  %v1195_v14 = vsel %vm205_vm1, %v1182_v60, -inf }
0x1ad4   :  { %v1188_v46 = vsub.f32 0.0, %v1187_v61  ;;  %v1308_v61 = vstv %s1705_s17 }
0x1ad6   :  { %v1189_v47 = vmul.f32 1.442695, %v1188_v46 }
0x1ad8   :  { %v1853_v15 = vpop.eup %1852  ;;  %1854 = vpow2.f32 %v1189_v47  ;;  %v1179_v47 = vpop.f32.mrf.mxu3 }
0x1ad9   :  { %1228 = vrot.lane.b32.xlu0 %v1853_v15, %s2021_s28  ;;  %v1184_v9 = vadd.f32 1.0, %v1853_v15 }
0x1adb   :  { %v1185_v12 = vmul.f32 0.5, %v1184_v9 }
0x1add   :  { %v1212_v16 = vsub.f32 1.0, %v1185_v12 }
0x1ade   :  { %v1855_v36 = vpop.eup %1854 }
0x1adf   :  { %v1191_v3 = vadd.f32 1.0, %v1855_v36 }
0x1ae1   :  { %1856 = vlog2.f32 %v1191_v3  ;;  %v1309_v3 = vmul.f32 %v2342_v19, %v1308_v61 }
0x1ae7   :  { %v1857_v1 = vpop.eup %1856 }
0x1ae8   :  { %v1193_v13 = vmul.f32 0.6931472, %v1857_v1 }
0x1aea   :  { %v1194_v7 = vadd.f32 %v1193_v13, %v1186_v2 }
0x1aec   :  { %1254 = vperm.xlu1 %1749, %v1194_v7  }
0x1af4   :  { %1750 = vset.pattern.permute.xlu1 %v2022_v44 }
0x1af5   :  { %1270 = vperm.xlu1 %1750, %v1185_v12  }
0x1afd   :  { %1753 = vset.pattern.permute.xlu1 %v2024_v52 }
0x1b1f   :  { %1196 = vmax.xlane.f32.xlu1 %v1195_v14 }
0x1b38   :  { %1215 = vperm.xlu1 %1753, %v1212_v16  }
0x1b40   :  { %1755 = vset.pattern.permute.xlu1 %v2022_v44 }
0x1b4b   :  { %v1229_v24 = vpop.permute.xlu0 %1228 }
0x1b4c   :  { %1703 = vmatmul.msk.f32.vlgmr.msrb.gmra.mxu0 %vm241_vm2, %v1229_v24 }
0x1b5e   :  { %v1255_v30 = vpop.permute.xlu1 %1254 }
0x1b67   :  { %v1271_v34 = vpop.permute.xlu1 %1270 }
0x1b92   :  { %v1197_v0 = vpop.xlane.xlu1 %1196 }
0x1b93   :  { %v1198_v4 = vsub.f32 %v1182_v60, %v1197_v0 }
0x1b95   :  { %v1199_v6 = vmul.f32 1.442695, %v1198_v4 }
0x1b97   :  { %1858 = vpow2.f32 %v1199_v6 }
0x1b9d   :  { %v1859_v35 = vpop.eup %1858 }
0x1b9e   :  { %v1201_v44 = vsel %vm205_vm1, %v1859_v35, 0.0 }
0x1baa   :  { %v1216_v53 = vpop.permute.xlu1 %1215 }
0x1bc9   :  { %v1249_v32 = vpop.f32.mrf.mxu0 }
0x1bca   :  { %v1257_v33 = vmul.f32 %v1255_v30, %v1249_v32 }
0x1bcc   :  { %v1258_v59 = vsel %vm270_vm3, %v1257_v33, -inf }
0x1bcd   :  { %1259 = vmax.xlane.f32.xlu2 %v1258_v59 }
0x1be5   :  { %1275 = vperm.xlu2 %1751, %v1212_v16  }
0x1bed   :  { %1756 = vset.pattern.permute.xlu2 %v2024_v52 }
0x1c0e   :  { %1202 = vadd.xlane.f32.xlu2 %v1201_v44 }
0x1c26   :  { %1221 = vrot.lane.b32.xlu2 %v1853_v15, %s2023_s29  ;;  %v1303_v15 = vstv %s1700_s18 }
0x1c40   :  { %v1260_v37 = vpop.xlane.xlu2 %1259 }
0x1c41   :  { %v1261_v39 = vsub.f32 %v1257_v33, %v1260_v37 }
0x1c43   :  { %v1262_v40 = vmul.f32 1.442695, %v1261_v39 }
0x1c45   :  { %1860 = vpow2.f32 %v1262_v40 }
0x1c48   :  { %v1276_v17 = vpop.permute.xlu2 %1275 }
0x1c49   :  { %v1278_v25 = vmul.f32 %v1276_v17, %v2385_v11 }
0x1c4b   :  { %v1861_v43 = vpop.eup %1860 }
0x1c4c   :  { %v1264_v45 = vsel %vm270_vm3, %v1861_v43, 0.0 }
0x1c4d   :  { %1265 = vadd.xlane.f32.xlu0 %v1264_v45 }
0x1c61   :  { %1208 = vperm.xlu0 %1752, %v1185_v12  }
0x1c69   :  { %1754 = vset.pattern.permute.xlu0 %v2020_v28  ;;  %v1218_v28 = vmul.f32 %v1216_v53, %v2392_v23 }
0x1c81   :  { %v1203_v18 = vpop.xlane.xlu2 %1202 }
0x1c89   :  { %v1222_v63 = vpop.permute.xlu2 %1221 }
0x1cc0   :  { %v1266_v49 = vpop.xlane.xlu0 %1265 }
0x1cc1   :  { %1862 = vrcp.f32 %v1266_v49 }
0x1cc2   :  { %1864 = vrcp.f32 %v1203_v18 }
0x1cc7   :  { %v1863_v20 = vpop.eup %1862 }
0x1cc8   :  { %v1268_v22 = vmul.f32 %v1863_v20, %v1861_v43  ;;  %v1865_v51 = vpop.eup %1864 }
0x1cc9   :  { %v1205_v55 = vmul.f32 %v1865_v51, %v1859_v35 }
0x1cca   :  { %v1273_v26 = vmul.f32 %v1271_v34, %v1268_v22 }
0x1ccc   :  { %v2430_v50 = vadd.f32 %v1278_v25, %v1273_v26 }
0x1cce   :  { %1704 = vmatmul.msk.f32.vlgmr.msrb.gmra.mxu1 %vm241_vm2, %v2430_v50 }
0x1cd3   :  { %v1209_v56 = vpop.permute.xlu0 %1208 }
0x1cd4   :  { %v1211_v57 = vmul.f32 %v1209_v56, %v1205_v55 }
0x1cd6   :  { %v2435_v58 = vadd.f32 %v1218_v28, %v1211_v57 }
0x1cd8   :  { %v1224_v60 = vmul.f32 %v1222_v63, %v2435_v58 }
0x1cda   :  { %v1225_v11 = vsel %vm205_vm1, %v1224_v60, 0.0 }
0x1cdb   :  { %1226 = vadd.xlane.f32.xlu1 %v1225_v11 }
0x1d4b   :  { %v1300_v46 = vpop.f32.mrf.mxu1 }
0x1d4c   :  { %v1307_v36 = vadd.f32 %v1300_v46, %v1179_v47 }
0x1d4e   :  { %v2440_v1 = vpop.xlane.xlu1 %1226  ;;  %v1310_v13 = vadd.f32 %v1309_v3, %v1307_v36 }
0x1d4f   :  { %v1304_v2 = vsub.f32 %v1303_v15, %v2440_v1 }
0x1d51   :  { %v1311_v7 = vmul.f32 %v1304_v2, %v2187_v41 }
0x1d53   :  { %v1312_v9 = vadd.f32 %v1311_v7, %v1310_v13 }
0x1d55   :  { %v1313_v12 = vadd.f32 %v1312_v9, %v2088_v5 }
0x1d57   :  { %1866 = vtanh.f32 %v1313_v12 }
0x1d5d   :  { %v1867_v14 = vpop.eup %1866 }
0x1d5e   :  { %1319 = vrot.lane.b32.xlu0 %v1867_v14, %s2018_s26  ;;  %v1315_v16 = vadd.f32 1.0, %v1867_v14 }
0x1d60   :  { %v1316_v24 = vmul.f32 0.5, %v1315_v16 }
0x1d62   :  { %v1317_v33 = vmul.f32 %v1316_v24, %v2405_v54 }
0x1dd0   :  { %v1320_v30 = vpop.permute.xlu0 %1319 }
0x1dd1   :  { %v1322_v32 = vmul.f32 %v1320_v30, %v1316_v24 }
0x1dd3   :  { %1324 = vrot.lane.b32.xlu0 %v1322_v32, %s2019_s27 }
0x1e45   :  { %v1325_v59 = vpop.permute.xlu0 %1324 }
0x1e46   :  { %v2448_v34 = vadd.f32 %v1325_v59, %v1317_v33 }
0x1e48   :  { %1868 = vtanh.f32 %v2448_v34 }
0x1e4e   :  { %v1869_v0 = vpop.eup %1868 }
0x1e4f   :  { %1330 = vrot.lane.b32.xlu2 %v1869_v0, %s2018_s26 }
0x1ea9   :  { %v1331_v4 = vpop.permute.xlu2 %1330 }
0x1eaa   :  { %v1333_v6 = vmul.f32 %v1331_v4, %v1316_v24 }
0x1eac   :  { %1335 = vrot.lane.b32.xlu0 %v1333_v6, %s2019_s27 }
0x1f1e   :  { %v1336_v35 = vpop.permute.xlu0 %1335 }
0x1f1f   :  { %1707 = vmatmul.msk.f32.vlgmr.msra.gmra.mxu2 %vm147_vm0, %v1336_v35  ;;  %1708 = vmatmul.msk.f32.vlgmr.msra.gmra.mxu3 %vm147_vm0, %v1336_v35 }
0x1fa2   :  { %v1356_v44 = vpop.f32.mrf.mxu2 }
0x1fa3   :  { %v1379_v54 = vadd.f32 %v1356_v44, %v2126_v29 }
0x1fa5   :  { %1870 = vtanh.f32 %v1379_v54  ;;  %v1384_v37 = vand.u32 2147483647, %v1379_v54  ;;  %v1383_v25 = vmax.f32 %v1379_v54, 0.0  ;;  %v1392_v63 = vsel %vm205_vm1, %v1379_v54, -inf }
0x1fa7   :  { %v1385_v39 = vsub.f32 0.0, %v1384_v37 }
0x1fa9   :  { %v1386_v40 = vmul.f32 1.442695, %v1385_v39 }
0x1fab   :  { %v1871_v43 = vpop.eup %1870  ;;  %1872 = vpow2.f32 %v1386_v40 }
0x1fac   :  { %1425 = vrot.lane.b32.xlu2 %v1871_v43, %s2021_s28  ;;  %v1381_v45 = vadd.f32 1.0, %v1871_v43 }
0x1fae   :  { %v1382_v17 = vmul.f32 0.5, %v1381_v45  ;;  %v1500_v45 = vstv %s1706_s19 }
0x1fb0   :  { %1467 = vperm.xlu1 %1755, %v1382_v17   ;;  %v1409_v20 = vsub.f32 1.0, %v1382_v17 }
0x1fb1   :  { %v1873_v49 = vpop.eup %1872 }
0x1fb2   :  { %v1388_v18 = vadd.f32 1.0, %v1873_v49 }
0x1fb4   :  { %1874 = vlog2.f32 %v1388_v18 }
0x1fb8   :  { %1472 = vperm.xlu1 %1755, %v1409_v20  }
0x1fba   :  { %v1875_v22 = vpop.eup %1874 }
0x1fbb   :  { %v1390_v26 = vmul.f32 0.6931472, %v1875_v22 }
0x1fbd   :  { %v1391_v51 = vadd.f32 %v1390_v26, %v1383_v25 }
0x1fbf   :  { %1451 = vperm.xlu0 %1754, %v1391_v51  }
0x1fc7   :  { %1757 = vset.pattern.permute.xlu0 %v2024_v52 }
0x2006   :  { %v1426_v53 = vpop.permute.xlu2 %1425 }
0x2007   :  { %1709 = vmatmul.msk.f32.vlgmr.msra.gmra.mxu0 %vm241_vm2, %v1426_v53 }
0x2022   :  { %v1468_v13 = vpop.permute.xlu1 %1467 }
0x202a   :  { %v1473_v7 = vpop.permute.xlu1 %1472 }
0x202b   :  { %v1475_v24 = vmul.f32 %v1473_v7, %v2430_v50  ;;  %v1504_v50 = vstv %s1711_s0 }
0x202c   :  { %v1505_v49 = vmul.f32 %v2342_v19, %v1504_v50 }
0x2031   :  { %v1452_v55 = vpop.permute.xlu0 %1451 }
0x2084   :  { %v1446_v56 = vpop.f32.mrf.mxu0 }
0x2085   :  { %v1454_v28 = vmul.f32 %v1452_v55, %v1446_v56 }
0x2087   :  { %v1455_v57 = vsel %vm270_vm3, %v1454_v28, -inf }
0x2088   :  { %1456 = vmax.xlane.f32.xlu2 %v1455_v57 }
0x2090   :  { %1393 = vmax.xlane.f32.xlu2 %v1392_v63 }
0x20a8   :  { %1405 = vperm.xlu2 %1756, %v1382_v17  }
0x20b0   :  { %1418 = vrot.lane.b32.xlu2 %v1871_v43, %s2023_s29  ;;  %v1376_v43 = vpop.f32.mrf.mxu3 }
0x20fb   :  { %v1457_v60 = vpop.xlane.xlu2 %1456 }
0x20fc   :  { %v1458_v11 = vsub.f32 %v1454_v28, %v1457_v60 }
0x20fe   :  { %v1459_v61 = vmul.f32 1.442695, %v1458_v11 }
0x2100   :  { %1876 = vpow2.f32 %v1459_v61 }
0x2103   :  { %v1394_v52 = vpop.xlane.xlu2 %1393 }
0x2104   :  { %v1395_v46 = vsub.f32 %v1379_v54, %v1394_v52 }
0x2106   :  { %v1877_v47 = vpop.eup %1876  ;;  %v1396_v15 = vmul.f32 1.442695, %v1395_v46 }
0x2107   :  { %v1461_v36 = vsel %vm270_vm3, %v1877_v47, 0.0 }
0x2108   :  { %1878 = vpow2.f32 %v1396_v15  ;;  %1462 = vadd.xlane.f32.xlu0 %v1461_v36 }
0x210b   :  { %v1406_v33 = vpop.permute.xlu2 %1405 }
0x210e   :  { %v1879_v3 = vpop.eup %1878 }
0x210f   :  { %v1398_v2 = vsel %vm205_vm1, %v1879_v3, 0.0 }
0x2110   :  { %1399 = vadd.xlane.f32.xlu1 %v1398_v2 }
0x2113   :  { %v1419_v54 = vpop.permute.xlu2 %1418 }
0x211c   :  { %1412 = vperm.xlu0 %1757, %v1409_v20  }
0x217b   :  { %v1463_v9 = vpop.xlane.xlu0 %1462 }
0x217c   :  { %1880 = vrcp.f32 %v1463_v9 }
0x2182   :  { %v1881_v12 = vpop.eup %1880 }
0x2183   :  { %v1465_v14 = vmul.f32 %v1881_v12, %v1877_v47  ;;  %v1400_v16 = vpop.xlane.xlu1 %1399 }
0x2184   :  { %1882 = vrcp.f32 %v1400_v16  ;;  %v1630_v16 = vrot.slane %v2235_v8, 7 }
0x2185   :  { %v1470_v30 = vmul.f32 %v1468_v13, %v1465_v14 }
0x2187   :  { %v1476_v32 = vadd.f32 %v1475_v24, %v1470_v30  ;;  %v1633_v30 = vrot.slane %v2285_v62, 6 }
0x2189   :  { %1710 = vmatmul.msk.f32.vlgmr.msra.gmra.mxu1 %vm241_vm2, %v1476_v32 }
0x218a   :  { %v1883_v59 = vpop.eup %1882 }
0x218b   :  { %v1402_v0 = vmul.f32 %v1883_v59, %v1879_v3 }
0x218d   :  { %v1408_v6 = vmul.f32 %v1406_v33, %v1402_v0  ;;  %v1636_v33 = vrot.slane %v2335_v38, 5  ;;  %v1650_v0 = vsel %vm1613_vm4, %v2181_v31, %v1630_v16 }
0x218e   :  { %v1413_v4 = vpop.permute.xlu0 %1412 }
0x218f   :  { %v1415_v35 = vmul.f32 %v1413_v4, %v2435_v58  ;;  %v1639_v4 = vrot.slane %v2392_v23, 4 }
0x2191   :  { %v2467_v44 = vadd.f32 %v1415_v35, %v1408_v6  ;;  %v1642_v6 = vrot.slane %v2435_v58, 3 }
0x2193   :  { %v1421_v37 = vmul.f32 %v1419_v54, %v2467_v44  ;;  %v1651_v54 = vsel %vm1615_vm5, %v1650_v0, %v1633_v30  ;;  %v1645_v62 = vrot.slane %v2467_v44, 2 }
0x2194   :  { %v1652_v38 = vsel %vm1617_vm6, %v1651_v54, %v1636_v33 }
0x2195   :  { %v1422_v39 = vsel %vm205_vm1, %v1421_v37, 0.0  ;;  %v1653_v31 = vsel %vm1619_vm7, %v1652_v38, %v1639_v4 }
0x2196   :  { %1423 = vadd.xlane.f32.xlu2 %v1422_v39  ;;  %v1654_v23 = vsel %vm1621_vm8, %v1653_v31, %v1642_v6 }
0x2206   :  { %v1497_v40 = vpop.f32.mrf.mxu1 }
0x2207   :  { %v1503_v17 = vadd.f32 %v1497_v40, %v1376_v43  ;;  %v1655_v40 = vsel %vm1623_vm9, %v1654_v23, %v1645_v62 }
0x2209   :  { %v2472_v18 = vpop.xlane.xlu2 %1423  ;;  %v1506_v22 = vadd.f32 %v1505_v49, %v1503_v17  ;;  %v1596_v17 = vrot.slane %v2290_v10, 6  ;;  %v1599_v49 = vrot.slane %v2345_v21, 5 }
0x220a   :  { %v1501_v20 = vsub.f32 %v1500_v45, %v2472_v18 }
0x220c   :  { %v1507_v25 = vmul.f32 %v1501_v20, %v2187_v41  ;;  %v1602_v20 = vrot.slane %v2397_v48, 4 }
0x220e   :  { %v1508_v26 = vadd.f32 %v1507_v25, %v1506_v22  ;;  %v1605_v25 = vrot.slane %v2440_v1, 3 }
0x2210   :  { %v1509_v51 = vadd.f32 %v1508_v26, %v2088_v5 }
0x2212   :  { %1884 = vtanh.f32 %v1509_v51  ;;  %v1608_v51 = vrot.slane %v2472_v18, 2 }
0x2218   :  { %v1885_v53 = vpop.eup %1884 }
0x2219   :  { %1515 = vrot.lane.b32.xlu1 %v1885_v53, %s2018_s26  ;;  %v1511_v55 = vadd.f32 1.0, %v1885_v53 }
0x221b   :  { %v1512_v56 = vmul.f32 0.5, %v1511_v55 }
0x221d   :  { %v1513_v19 = vmul.f32 %v1512_v56, %v2448_v34 }
0x228b   :  { %v1516_v28 = vpop.permute.xlu1 %1515 }
0x228c   :  { %v1518_v57 = vmul.f32 %v1516_v28, %v1512_v56 }
0x228e   :  { %1520 = vrot.lane.b32.xlu0 %v1518_v57, %s2019_s27 }
0x2300   :  { %v1521_v63 = vpop.permute.xlu0 %1520 }
0x2301   :  { %v1523_v60 = vadd.f32 %v1521_v63, %v1513_v19 }
0x2303   :  { %1886 = vtanh.f32 %v1523_v60 }
0x2309   :  { %v1887_v11 = vpop.eup %1886 }
0x230a   :  { %1526 = vrot.lane.b32.xlu0 %v1887_v11, %s2018_s26 }
0x237c   :  { %v1527_v41 = vpop.permute.xlu0 %1526 }
0x237d   :  { %v1529_v5 = vmul.f32 %v1527_v41, %v1512_v56 }
0x237f   :  { %1531 = vrot.lane.b32.xlu0 %v1529_v5, %s2019_s27 }
0x23f1   :  { %v1532_v61 = vpop.permute.xlu0 %1531 }
0x23f2   :  { %1712 = vmatmul.msk.f32.vlgmr.msrb.gmra.mxu2 %vm147_vm0, %v1532_v61 }
0x2475   :  { %v1552_v52 = vpop.f32.mrf.mxu2 }
0x2476   :  { %v1555_v46 = vadd.f32 %v1552_v52, %v2126_v29 }
0x2478   :  { %1888 = vtanh.f32 %v1555_v46  ;;  %v1559_v47 = vsel %vm205_vm1, %v1555_v46, -inf }
0x2479   :  { %1560 = vmax.xlane.f32.xlu1 %v1559_v47 }
0x247e   :  { %v1889_v34 = vpop.eup %1888 }
0x247f   :  { %v1557_v15 = vadd.f32 1.0, %v1889_v34 }
0x2481   :  { %v1558_v36 = vmul.f32 0.5, %v1557_v15 }
0x2483   :  { %1572 = vperm.xlu2 %1756, %v1558_v36   ;;  %v1576_v3 = vsub.f32 1.0, %v1558_v36 }
0x248b   :  { %1579 = vperm.xlu2 %1756, %v1576_v3  }
0x2492   :  { %1585 = vrot.lane.b32.xlu1 %v1889_v34, %s2023_s29 }
0x24dd   :  { %v1573_v29 = vpop.permute.xlu2 %1572 }
0x24e5   :  { %v1580_v32 = vpop.permute.xlu2 %1579 }
0x24e6   :  { %v1582_v8 = vmul.f32 %v1580_v32, %v2467_v44  ;;  %v1593_v44 = vrot.slane %v2240_v27, 7 }
0x24e8   :  { %v1614_v22 = vsel %vm1613_vm4, %v2189_v42, %v1593_v44 }
0x24e9   :  { %v1616_v26 = vsel %vm1615_vm5, %v1614_v22, %v1596_v17 }
0x24ea   :  { %v1618_v53 = vsel %vm1617_vm6, %v1616_v26, %v1599_v49 }
0x24eb   :  { %v1620_v55 = vsel %vm1619_vm7, %v1618_v53, %v1602_v20 }
0x24ec   :  { %v1561_v2 = vpop.xlane.xlu1 %1560  ;;  %v1622_v10 = vsel %vm1621_vm8, %v1620_v55, %v1605_v25 }
0x24ed   :  { %v1562_v13 = vsub.f32 %v1555_v46, %v1561_v2  ;;  %v1624_v48 = vsel %vm1623_vm9, %v1622_v10, %v1608_v51 }
0x24ef   :  { %v1563_v7 = vmul.f32 1.442695, %v1562_v13 }
0x24f1   :  { %1890 = vpow2.f32 %v1563_v7 }
0x24f7   :  { %v1891_v9 = vpop.eup %1890 }
0x24f8   :  { %v1565_v12 = vsel %vm205_vm1, %v1891_v9, 0.0 }
0x24f9   :  { %1566 = vadd.xlane.f32.xlu0 %v1565_v12 }
0x2504   :  { %v1586_v39 = vpop.permute.xlu1 %1585 }
0x256c   :  { %v1567_v14 = vpop.xlane.xlu0 %1566 }
0x256d   :  { %1892 = vrcp.f32 %v1567_v14 }
0x2573   :  { %v1893_v24 = vpop.eup %1892 }
0x2574   :  { %v1569_v59 = vmul.f32 %v1893_v24, %v1891_v9 }
0x2576   :  { %v1575_v35 = vmul.f32 %v1573_v29, %v1569_v59 }
0x2578   :  { %v1583_v37 = vadd.f32 %v1582_v8, %v1575_v35 }
0x257a   :  { %v1588_v50 = vmul.f32 %v1586_v39, %v1583_v37  ;;  %v1648_v58 = vrot.slane %v1583_v37, 1 }
0x257c   :  { %v1589_v43 = vsel %vm205_vm1, %v1588_v50, 0.0  ;;  %v1656_v45 = vsel %vm1625_vm10, %v1655_v40, %v1648_v58 }
0x257d   :  { %1590 = vadd.xlane.f32.xlu2 %v1589_v43  ;;  %1658 = vst.msk [vmem:[%s2530_s7] sm:$0xff] %vm1657_vm11, %v1656_v45 }
0x25f0   :  { %v1591_v27 = vpop.xlane.xlu2 %1590 }
0x25f1   :  { %v1611_v21 = vrot.slane %v1591_v27, 1 }
0x25f3   :  { %v1626_v56 = vsel %vm1625_vm10, %v1624_v48, %v1611_v21 }
0x25f4   :  { %1628 = vst.msk [vmem:[%s2529_s6] sm:$0xff] %vm1627_vm12, %v1626_v56 }
0x25f5   :  { %1667 = vsyncpa [#allocation3], 1 }
0x25f6   :  { %1668 = vsyncpa [#allocation9], 1 }
0x25f7   :  { %1669 = vsyncpa [#allocation4], 1 }
0x25f8   :  { %1670 = vsyncpa [#allocation6], 1 }

</bundles_post_ra>
